<compile_context>
chip_gen: v6e
topology: v6e:2x2x1
jax: 0.10.0
libtpu: 0.0.40
codegen_flags: <defaults>
</compile_context>

<pallas_src>
import functools

import jax
import jax.numpy as jnp
from jax.experimental import pallas as pl
from jax.experimental.pallas import tpu as pltpu


def _round_up(x, m):
    return ((x + m - 1) // m) * m


# --------------------------------------------------------------------------- #
# Kernel 1: hoisted input projections + encoder/decoder recurrences
# --------------------------------------------------------------------------- #
def recurrence_kernel(embed_ref,      # (T, TB, E)  time-major embeddings (batch tile)
                      enc_wih_ref,    # (E, 4H)   gate order [i, f, g, o] on lanes
                      enc_b_ref,      # (1, 4H)   b_ih + b_hh folded
                      enc_whh_ref,    # (H, 4H)
                      dec_wih_ref,    # (E, 4H)
                      dec_b_ref,      # (1, 4H)
                      dec_whh_ref,    # (H, 4H)
                      dec_h_ref,      # out: (T, TB, H) decoder hidden states
                      *, T, TB, H):
    E = embed_ref.shape[-1]
    # TB is a multiple of 8, so this collapse is a pure view (no relayout).
    x = embed_ref[...].reshape(T * TB, E)

    def cell(pre, h, c, whh):
        # pre already holds x_t @ W_ih + b; only the recurrent matmul remains.
        g = pre + jnp.dot(h, whh, preferred_element_type=jnp.float32)     # (TB, 4H)
        i = jax.nn.sigmoid(g[:, 0:H])
        f = jax.nn.sigmoid(g[:, H:2 * H])
        gg = jnp.tanh(g[:, 2 * H:3 * H])
        o = jax.nn.sigmoid(g[:, 3 * H:4 * H])
        c_new = f * c + i * gg
        return o * jnp.tanh(c_new), c_new
    # NOTE(perf): for small/medium H the recurrence is EUP-bound (5 transcendentals
    # per element per step); the h@W_hh MXU push and gate loads hide under it.

    h = jnp.zeros((TB, H), jnp.float32)
    c = jnp.zeros((TB, H), jnp.float32)

    # ---- encoder: one hoisted MXU pass for its gates, then the serial recurrence.
    enc_whh = enc_whh_ref[...]
    gates = (jnp.dot(x, enc_wih_ref[...], preferred_element_type=jnp.float32)
             + enc_b_ref[...]).reshape(T, TB, 4 * H)
    for t in range(T):                       # T small & static -> fully unrolled
        h, c = cell(gates[t], h, c, enc_whh)

    # ---- decoder: seeded with encoder (h, c); gates computed only now (encoder
    # gates are dead), each h_t stored straight into the output slab.
    dec_whh = dec_whh_ref[...]
    gates = (jnp.dot(x, dec_wih_ref[...], preferred_element_type=jnp.float32)
             + dec_b_ref[...]).reshape(T, TB, 4 * H)
    for t in range(T):
        h, c = cell(gates[t], h, c, dec_whh)
        dec_h_ref[t] = h                     # aligned, unmasked (TB, H) slab store


# --------------------------------------------------------------------------- #
# Kernel 2: output projection, tiled over (M, V), both axes parallel
# --------------------------------------------------------------------------- #
def fc_kernel(h_ref, w_ref, b_ref, out_ref):
    out_ref[...] = (jnp.dot(h_ref[...], w_ref[...],
                            preferred_element_type=jnp.float32)
                    + b_ref[...])


# --------------------------------------------------------------------------- #
# Wrapper
# --------------------------------------------------------------------------- #
def seq2seq_lstm_forward(tokens, params):
    """tokens: int32 (B, T). Returns logits (B, T, V) float32."""
    emb_table = params["embedding"]                        # (V, E)
    B, T = tokens.shape
    E = emb_table.shape[1]
    H = params["enc_whh"].shape[0]
    H4 = 4 * H
    V = params["fc_w"].shape[1]

    # ---- batch padding / tiling: sublane alignment + (on v7x) 2-TC batch split.
    B8 = _round_up(B, 8)
    tile_b = B8 if B8 <= 256 else 256
    B_pad = _round_up(B8, tile_b)
    grid_b = B_pad // tile_b

    tokens_p = jnp.pad(tokens, ((0, B_pad - B), (0, 0)))
    # Embedding lookup in glue, time-major: (T, B_pad, E).
    # TODO(synk): integer gather has no clean small-scale Pallas equivalent; kept in JAX.
    embed = jnp.take(emb_table, jnp.transpose(tokens_p), axis=0)

    rec_flops = 2 * T * B_pad * E * 8 * H + 2 * (2 * T * B_pad * H * H4)
    rec_trans = 2 * T * B_pad * 5 * H
    rec_bytes = 4 * (T * B_pad * E + 2 * (E * H4 + H4 + H * H4) + T * B_pad * H)

    full2d = lambda shape: pl.BlockSpec(shape, lambda i: (0, 0))

    dec_h = pl.pallas_call(
        functools.partial(recurrence_kernel, T=T, TB=tile_b, H=H),
        out_shape=jax.ShapeDtypeStruct((T, B_pad, H), jnp.float32),
        grid=(grid_b,),
        in_specs=[pl.BlockSpec((T, tile_b, E), lambda i: (0, i, 0)),
                  full2d((E, H4)), full2d((1, H4)), full2d((H, H4)),
                  full2d((E, H4)), full2d((1, H4)), full2d((H, H4))],
        out_specs=pl.BlockSpec((T, tile_b, H), lambda i: (0, i, 0)),
        compiler_params=pltpu.CompilerParams(
            dimension_semantics=("parallel",),
            vmem_limit_bytes=32 * 1024 * 1024),
        cost_estimate=pl.CostEstimate(flops=rec_flops,
                                      transcendentals=rec_trans,
                                      bytes_accessed=rec_bytes),
    )(embed, params["enc_wih"], params["enc_b"], params["enc_whh"],
      params["dec_wih"], params["dec_b"], params["dec_whh"])

    # ---- output projection: (M, H) @ (H, V_pad), lane-dense tiles, V padded to a
    # multiple of the tile so stores are never masked; tile_m maximised so fc_w is
    # streamed from HBM as few times as possible.
    M = T * B_pad
    dec_h2 = dec_h.reshape(M, H)

    V128 = _round_up(V, 128)
    tile_v = min(V128, 512)
    V_pad = _round_up(V, tile_v)
    tile_m = M if M <= 512 else 512
    M_pad = _round_up(M, tile_m)

    if M_pad != M:
        dec_h2 = jnp.pad(dec_h2, ((0, M_pad - M), (0, 0)))
    fc_w, fc_b = params["fc_w"], params["fc_b"]
    if V_pad != V:
        fc_w = jnp.pad(fc_w, ((0, 0), (0, V_pad - V)))
        fc_b = jnp.pad(fc_b, ((0, 0), (0, V_pad - V)))

    grid = (M_pad // tile_m, V_pad // tile_v)
    logits = pl.pallas_call(
        fc_kernel,
        out_shape=jax.ShapeDtypeStruct((M_pad, V_pad), jnp.float32),
        grid=grid,
        in_specs=[pl.BlockSpec((tile_m, H), lambda i, j: (i, 0)),
                  pl.BlockSpec((H, tile_v), lambda i, j: (0, j)),
                  pl.BlockSpec((1, tile_v), lambda i, j: (0, j))],
        out_specs=pl.BlockSpec((tile_m, tile_v), lambda i, j: (i, j)),
        compiler_params=pltpu.CompilerParams(
            dimension_semantics=("parallel", "parallel"),
            # Safe everywhere (above the 32 MiB default, below v7x's 64 MiB VMEM);
            # on v5e/v6e (128 MiB) this can be raised further for bigger tiles.
            vmem_limit_bytes=48 * 1024 * 1024),
        cost_estimate=pl.CostEstimate(
            flops=2 * M_pad * H * V_pad,
            transcendentals=0,
            bytes_accessed=4 * (M_pad * H + H * V_pad + V_pad + M_pad * V_pad)),
    )(dec_h2, fc_w, fc_b)

    # (M_pad, V_pad) time-major -> (B, T, V) (batch_first, like the PyTorch module).
    out = logits[:M].reshape(T, B_pad, V_pad)[:, :B, :V]
    return jnp.transpose(out, (1, 0, 2))


# --------------------------------------------------------------------------- #
# Params / reference
# --------------------------------------------------------------------------- #
def make_params(key, vocab_size, embed_size, hidden_size):
    ks = jax.random.split(key, 10)
    s = 0.1
    H4 = 4 * hidden_size
    return {
        "embedding": s * jax.random.normal(ks[0], (vocab_size, embed_size), jnp.float32),
        # LSTM weights stored already transposed: x @ W_ih^T -> (E,4H), h @ W_hh^T -> (H,4H)
        "enc_wih": s * jax.random.normal(ks[1], (embed_size, H4), jnp.float32),
        "enc_whh": s * jax.random.normal(ks[2], (hidden_size, H4), jnp.float32),
        "enc_b":   s * jax.random.normal(ks[3], (1, H4), jnp.float32),   # b_ih + b_hh combined
        "dec_wih": s * jax.random.normal(ks[4], (embed_size, H4), jnp.float32),
        "dec_whh": s * jax.random.normal(ks[5], (hidden_size, H4), jnp.float32),
        "dec_b":   s * jax.random.normal(ks[6], (1, H4), jnp.float32),
        "fc_w":    s * jax.random.normal(ks[7], (hidden_size, vocab_size), jnp.float32),
        "fc_b":    s * jax.random.normal(ks[8], (1, vocab_size), jnp.float32),
    }


def reference_forward(tokens, params):
    """Pure-JAX reference (same math as the PyTorch module's forward)."""
    H = params["enc_whh"].shape[0]
    embed = jnp.take(params["embedding"], tokens, axis=0)

    def cell(x_t, h, c, wih, whh, b):
        g = x_t @ wih + h @ whh + b
        i, f, gg, o = (jax.nn.sigmoid(g[:, :H]), jax.nn.sigmoid(g[:, H:2 * H]),
                       jnp.tanh(g[:, 2 * H:3 * H]), jax.nn.sigmoid(g[:, 3 * H:]))
        c = f * c + i * gg
        return o * jnp.tanh(c), c

    B, T, _ = embed.shape
    h = jnp.zeros((B, H), jnp.float32)
    c = jnp.zeros((B, H), jnp.float32)
    for t in range(T):
        h, c = cell(embed[:, t, :], h, c, params["enc_wih"], params["enc_whh"], params["enc_b"])
    outs = []
    for t in range(T):
        h, c = cell(embed[:, t, :], h, c, params["dec_wih"], params["dec_whh"], params["dec_b"])
        outs.append(h @ params["fc_w"] + params["fc_b"])
    return jnp.stack(outs, axis=1)


if __name__ == "__main__":
    vocab_size, embed_size, hidden_size = 128, 32, 32
    B, T = 2, 8

    key = jax.random.PRNGKey(0)
    kp, kt = jax.random.split(key)
    params = make_params(kp, vocab_size, embed_size, hidden_size)
    tokens = jax.random.randint(kt, (B, T), 0, vocab_size, dtype=jnp.int32)

    out = jax.jit(seq2seq_lstm_forward)(tokens, params)
    out = jax.block_until_ready(out)

    ref = reference_forward(tokens, params)
    assert out.shape == (B, T, vocab_size)
    assert jnp.allclose(out, ref, atol=1e-4, rtol=1e-4), "mismatch vs reference"
    print("KERNEL_OK")
</pallas_src>

<mosaic_0001>
module attributes {stable_mosaic.version = 11 : i64} {
  func.func @fc_kernel(%arg0: i32, %arg1: i32, %arg2: memref<64x32xf32, #tpu.memory_space<vmem>>, %arg3: memref<32x128xf32, #tpu.memory_space<vmem>>, %arg4: memref<1x128xf32, #tpu.memory_space<vmem>>, %arg5: memref<64x128xf32, #tpu.memory_space<vmem>>) attributes {dimension_semantics = [#tpu.dimension_semantics<parallel>, #tpu.dimension_semantics<parallel>], iteration_bounds = array<i64: 1, 1>, scalar_prefetch = 0 : i64, scratch_operands = 0 : i64, tpu.core_type = #tpu.core_type<tc>, window_params = [{transform_indices = @transform_0, window_bounds = array<i64: 64, 32>}, {transform_indices = @transform_1, window_bounds = array<i64: 32, 128>}, {transform_indices = @transform_2, window_bounds = array<i64: 1, 128>}, {transform_indices = @transform_3, window_bounds = array<i64: 64, 128>}]} {
    %c0 = arith.constant 0 : index
    %c0_0 = arith.constant 0 : index
    %0 = vector.load %arg2[%c0, %c0_0] : memref<64x32xf32, #tpu.memory_space<vmem>>, vector<64x32xf32>
    %c0_1 = arith.constant 0 : index
    %c0_2 = arith.constant 0 : index
    %1 = vector.load %arg3[%c0_1, %c0_2] : memref<32x128xf32, #tpu.memory_space<vmem>>, vector<32x128xf32>
    %cst = arith.constant dense<0.000000e+00> : vector<64x128xf32>
    %2 = tpu.matmul %0, %1, %cst {dimension_numbers = #tpu.dot_dimension_numbers<[1], [0], [0], [1], [0, 0, 1, 1], [], []>} : vector<64x32xf32>, vector<32x128xf32>, vector<64x128xf32> -> vector<64x128xf32>
    %c0_3 = arith.constant 0 : index
    %c0_4 = arith.constant 0 : index
    %3 = vector.load %arg4[%c0_3, %c0_4] : memref<1x128xf32, #tpu.memory_space<vmem>>, vector<1x128xf32>
    %4 = vector.broadcast %3 : vector<1x128xf32> to vector<64x128xf32>
    %5 = arith.addf %2, %4 : vector<64x128xf32>
    %c0_5 = arith.constant 0 : index
    %c0_6 = arith.constant 0 : index
    %6 = vector.load %arg5[%c0_5, %c0_6] : memref<64x128xf32, #tpu.memory_space<vmem>>, vector<64x128xf32>
    tpu.vector_store %arg5[%c0_5, %c0_6], %5 {strides = array<i32>} : memref<64x128xf32, #tpu.memory_space<vmem>>, vector<64x128xf32>,
    return
  }
  func.func @transform_0(%arg0: i32, %arg1: i32) -> (i32, i32) {
    %c0_i32 = arith.constant 0 : i32
    %c0_i32_0 = arith.constant 0 : i32
    return %arg0, %c0_i32 : i32, i32
  }
  func.func @transform_1(%arg0: i32, %arg1: i32) -> (i32, i32) {
    %c0_i32 = arith.constant 0 : i32
    %c0_i32_0 = arith.constant 0 : i32
    return %c0_i32, %arg1 : i32, i32
  }
  func.func @transform_2(%arg0: i32, %arg1: i32) -> (i32, i32) {
    %c0_i32 = arith.constant 0 : i32
    %c0_i32_0 = arith.constant 0 : i32
    return %c0_i32, %arg1 : i32, i32
  }
  func.func @transform_3(%arg0: i32, %arg1: i32) -> (i32, i32) {
    %c0_i32 = arith.constant 0 : i32
    return %arg0, %arg1 : i32, i32
  }
}

module attributes {stable_mosaic.version = 11 : i64} {
  func.func @recurrence_kernel(%arg0: i32, %arg1: memref<8x8x32xf32, #tpu.memory_space<vmem>>, %arg2: memref<32x128xf32, #tpu.memory_space<vmem>>, %arg3: memref<1x128xf32, #tpu.memory_space<vmem>>, %arg4: memref<32x128xf32, #tpu.memory_space<vmem>>, %arg5: memref<32x128xf32, #tpu.memory_space<vmem>>, %arg6: memref<1x128xf32, #tpu.memory_space<vmem>>, %arg7: memref<32x128xf32, #tpu.memory_space<vmem>>, %arg8: memref<8x8x32xf32, #tpu.memory_space<vmem>>) attributes {dimension_semantics = [#tpu.dimension_semantics<parallel>], iteration_bounds = array<i64: 1>, scalar_prefetch = 0 : i64, scratch_operands = 0 : i64, tpu.core_type = #tpu.core_type<tc>, window_params = [{transform_indices = @transform_0, window_bounds = array<i64: 8, 8, 32>}, {pipeline_mode = #tpu.pipeline_mode<synchronous>, transform_indices = @transform_1, window_bounds = array<i64: 32, 128>}, {pipeline_mode = #tpu.pipeline_mode<synchronous>, transform_indices = @transform_2, window_bounds = array<i64: 1, 128>}, {pipeline_mode = #tpu.pipeline_mode<synchronous>, transform_indices = @transform_3, window_bounds = array<i64: 32, 128>}, {pipeline_mode = #tpu.pipeline_mode<synchronous>, transform_indices = @transform_4, window_bounds = array<i64: 32, 128>}, {pipeline_mode = #tpu.pipeline_mode<synchronous>, transform_indices = @transform_5, window_bounds = array<i64: 1, 128>}, {pipeline_mode = #tpu.pipeline_mode<synchronous>, transform_indices = @transform_6, window_bounds = array<i64: 32, 128>}, {transform_indices = @transform_7, window_bounds = array<i64: 8, 8, 32>}]} {
    %c0 = arith.constant 0 : index
    %c0_0 = arith.constant 0 : index
    %c0_1 = arith.constant 0 : index
    %0 = vector.load %arg1[%c0, %c0_0, %c0_1] : memref<8x8x32xf32, #tpu.memory_space<vmem>>, vector<8x8x32xf32>
    %1 = vector.shape_cast %0 : vector<8x8x32xf32> to vector<64x32xf32>
    %cst = arith.constant 0.000000e+00 : f32
    %2 = vector.broadcast %cst : f32 to vector<8x32xf32>
    %cst_2 = arith.constant 0.000000e+00 : f32
    %3 = vector.broadcast %cst_2 : f32 to vector<8x32xf32>
    %c0_3 = arith.constant 0 : index
    %c0_4 = arith.constant 0 : index
    %4 = vector.load %arg4[%c0_3, %c0_4] : memref<32x128xf32, #tpu.memory_space<vmem>>, vector<32x128xf32>
    %c0_5 = arith.constant 0 : index
    %c0_6 = arith.constant 0 : index
    %5 = vector.load %arg2[%c0_5, %c0_6] : memref<32x128xf32, #tpu.memory_space<vmem>>, vector<32x128xf32>
    %cst_7 = arith.constant dense<0.000000e+00> : vector<64x128xf32>
    %6 = tpu.matmul %1, %5, %cst_7 {dimension_numbers = #tpu.dot_dimension_numbers<[1], [0], [0], [1], [0, 0, 1, 1], [], []>} : vector<64x32xf32>, vector<32x128xf32>, vector<64x128xf32> -> vector<64x128xf32>
    %c0_8 = arith.constant 0 : index
    %c0_9 = arith.constant 0 : index
    %7 = vector.load %arg3[%c0_8, %c0_9] : memref<1x128xf32, #tpu.memory_space<vmem>>, vector<1x128xf32>
    %8 = vector.broadcast %7 : vector<1x128xf32> to vector<64x128xf32>
    %9 = arith.addf %6, %8 : vector<64x128xf32>
    %10 = vector.shape_cast %9 : vector<64x128xf32> to vector<8x8x128xf32>
    %11 = vector.extract_strided_slice %10 {offsets = [0, 0, 0], sizes = [1, 8, 128], strides = [1, 1, 1]} : vector<8x8x128xf32> to vector<1x8x128xf32>
    %12 = vector.shape_cast %11 : vector<1x8x128xf32> to vector<8x128xf32>
    %cst_10 = arith.constant dense<0.000000e+00> : vector<8x128xf32>
    %13 = tpu.matmul %2, %4, %cst_10 {dimension_numbers = #tpu.dot_dimension_numbers<[1], [0], [0], [1], [0, 0, 1, 1], [], []>} : vector<8x32xf32>, vector<32x128xf32>, vector<8x128xf32> -> vector<8x128xf32>
    %14 = arith.addf %12, %13 : vector<8x128xf32>
    %15 = vector.extract_strided_slice %14 {offsets = [0, 0], sizes = [8, 32], strides = [1, 1]} : vector<8x128xf32> to vector<8x32xf32>
    %16 = arith.negf %15 : vector<8x32xf32>
    %17 = math.exp %16 : vector<8x32xf32>
    %cst_11 = arith.constant 1.000000e+00 : f32
    %18 = vector.broadcast %cst_11 : f32 to vector<8x32xf32>
    %19 = arith.addf %18, %17 : vector<8x32xf32>
    %20 = arith.divf %18, %19 : vector<8x32xf32>
    %21 = vector.extract_strided_slice %14 {offsets = [0, 32], sizes = [8, 32], strides = [1, 1]} : vector<8x128xf32> to vector<8x32xf32>
    %22 = arith.negf %21 : vector<8x32xf32>
    %23 = math.exp %22 : vector<8x32xf32>
    %cst_12 = arith.constant 1.000000e+00 : f32
    %24 = vector.broadcast %cst_12 : f32 to vector<8x32xf32>
    %25 = arith.addf %24, %23 : vector<8x32xf32>
    %26 = arith.divf %24, %25 : vector<8x32xf32>
    %27 = vector.extract_strided_slice %14 {offsets = [0, 64], sizes = [8, 32], strides = [1, 1]} : vector<8x128xf32> to vector<8x32xf32>
    %28 = math.tanh %27 : vector<8x32xf32>
    %29 = vector.extract_strided_slice %14 {offsets = [0, 96], sizes = [8, 32], strides = [1, 1]} : vector<8x128xf32> to vector<8x32xf32>
    %30 = arith.negf %29 : vector<8x32xf32>
    %31 = math.exp %30 : vector<8x32xf32>
    %cst_13 = arith.constant 1.000000e+00 : f32
    %32 = vector.broadcast %cst_13 : f32 to vector<8x32xf32>
    %33 = arith.addf %32, %31 : vector<8x32xf32>
    %34 = arith.divf %32, %33 : vector<8x32xf32>
    %35 = arith.mulf %26, %3 : vector<8x32xf32>
    %36 = arith.mulf %20, %28 : vector<8x32xf32>
    %37 = arith.addf %35, %36 : vector<8x32xf32>
    %38 = math.tanh %37 : vector<8x32xf32>
    %39 = arith.mulf %34, %38 : vector<8x32xf32>
    %40 = vector.extract_strided_slice %10 {offsets = [1, 0, 0], sizes = [1, 8, 128], strides = [1, 1, 1]} : vector<8x8x128xf32> to vector<1x8x128xf32>
    %41 = vector.shape_cast %40 : vector<1x8x128xf32> to vector<8x128xf32>
    %cst_14 = arith.constant dense<0.000000e+00> : vector<8x128xf32>
    %42 = tpu.matmul %39, %4, %cst_14 {dimension_numbers = #tpu.dot_dimension_numbers<[1], [0], [0], [1], [0, 0, 1, 1], [], []>} : vector<8x32xf32>, vector<32x128xf32>, vector<8x128xf32> -> vector<8x128xf32>
    %43 = arith.addf %41, %42 : vector<8x128xf32>
    %44 = vector.extract_strided_slice %43 {offsets = [0, 0], sizes = [8, 32], strides = [1, 1]} : vector<8x128xf32> to vector<8x32xf32>
    %45 = arith.negf %44 : vector<8x32xf32>
    %46 = math.exp %45 : vector<8x32xf32>
    %cst_15 = arith.constant 1.000000e+00 : f32
    %47 = vector.broadcast %cst_15 : f32 to vector<8x32xf32>
    %48 = arith.addf %47, %46 : vector<8x32xf32>
    %49 = arith.divf %47, %48 : vector<8x32xf32>
    %50 = vector.extract_strided_slice %43 {offsets = [0, 32], sizes = [8, 32], strides = [1, 1]} : vector<8x128xf32> to vector<8x32xf32>
    %51 = arith.negf %50 : vector<8x32xf32>
    %52 = math.exp %51 : vector<8x32xf32>
    %cst_16 = arith.constant 1.000000e+00 : f32
    %53 = vector.broadcast %cst_16 : f32 to vector<8x32xf32>
    %54 = arith.addf %53, %52 : vector<8x32xf32>
    %55 = arith.divf %53, %54 : vector<8x32xf32>
    %56 = vector.extract_strided_slice %43 {offsets = [0, 64], sizes = [8, 32], strides = [1, 1]} : vector<8x128xf32> to vector<8x32xf32>
    %57 = math.tanh %56 : vector<8x32xf32>
    %58 = vector.extract_strided_slice %43 {offsets = [0, 96], sizes = [8, 32], strides = [1, 1]} : vector<8x128xf32> to vector<8x32xf32>
    %59 = arith.negf %58 : vector<8x32xf32>
    %60 = math.exp %59 : vector<8x32xf32>
    %cst_17 = arith.constant 1.000000e+00 : f32
    %61 = vector.broadcast %cst_17 : f32 to vector<8x32xf32>
    %62 = arith.addf %61, %60 : vector<8x32xf32>
    %63 = arith.divf %61, %62 : vector<8x32xf32>
    %64 = arith.mulf %55, %37 : vector<8x32xf32>
    %65 = arith.mulf %49, %57 : vector<8x32xf32>
    %66 = arith.addf %64, %65 : vector<8x32xf32>
    %67 = math.tanh %66 : vector<8x32xf32>
    %68 = arith.mulf %63, %67 : vector<8x32xf32>
    %69 = vector.extract_strided_slice %10 {offsets = [2, 0, 0], sizes = [1, 8, 128], strides = [1, 1, 1]} : vector<8x8x128xf32> to vector<1x8x128xf32>
    %70 = vector.shape_cast %69 : vector<1x8x128xf32> to vector<8x128xf32>
    %cst_18 = arith.constant dense<0.000000e+00> : vector<8x128xf32>
    %71 = tpu.matmul %68, %4, %cst_18 {dimension_numbers = #tpu.dot_dimension_numbers<[1], [0], [0], [1], [0, 0, 1, 1], [], []>} : vector<8x32xf32>, vector<32x128xf32>, vector<8x128xf32> -> vector<8x128xf32>
    %72 = arith.addf %70, %71 : vector<8x128xf32>
    %73 = vector.extract_strided_slice %72 {offsets = [0, 0], sizes = [8, 32], strides = [1, 1]} : vector<8x128xf32> to vector<8x32xf32>
    %74 = arith.negf %73 : vector<8x32xf32>
    %75 = math.exp %74 : vector<8x32xf32>
    %cst_19 = arith.constant 1.000000e+00 : f32
    %76 = vector.broadcast %cst_19 : f32 to vector<8x32xf32>
    %77 = arith.addf %76, %75 : vector<8x32xf32>
    %78 = arith.divf %76, %77 : vector<8x32xf32>
    %79 = vector.extract_strided_slice %72 {offsets = [0, 32], sizes = [8, 32], strides = [1, 1]} : vector<8x128xf32> to vector<8x32xf32>
    %80 = arith.negf %79 : vector<8x32xf32>
    %81 = math.exp %80 : vector<8x32xf32>
    %cst_20 = arith.constant 1.000000e+00 : f32
    %82 = vector.broadcast %cst_20 : f32 to vector<8x32xf32>
    %83 = arith.addf %82, %81 : vector<8x32xf32>
    %84 = arith.divf %82, %83 : vector<8x32xf32>
    %85 = vector.extract_strided_slice %72 {offsets = [0, 64], sizes = [8, 32], strides = [1, 1]} : vector<8x128xf32> to vector<8x32xf32>
    %86 = math.tanh %85 : vector<8x32xf32>
    %87 = vector.extract_strided_slice %72 {offsets = [0, 96], sizes = [8, 32], strides = [1, 1]} : vector<8x128xf32> to vector<8x32xf32>
    %88 = arith.negf %87 : vector<8x32xf32>
    %89 = math.exp %88 : vector<8x32xf32>
    %cst_21 = arith.constant 1.000000e+00 : f32
    %90 = vector.broadcast %cst_21 : f32 to vector<8x32xf32>
    %91 = arith.addf %90, %89 : vector<8x32xf32>
    %92 = arith.divf %90, %91 : vector<8x32xf32>
    %93 = arith.mulf %84, %66 : vector<8x32xf32>
    %94 = arith.mulf %78, %86 : vector<8x32xf32>
    %95 = arith.addf %93, %94 : vector<8x32xf32>
    %96 = math.tanh %95 : vector<8x32xf32>
    %97 = arith.mulf %92, %96 : vector<8x32xf32>
    %98 = vector.extract_strided_slice %10 {offsets = [3, 0, 0], sizes = [1, 8, 128], strides = [1, 1, 1]} : vector<8x8x128xf32> to vector<1x8x128xf32>
    %99 = vector.shape_cast %98 : vector<1x8x128xf32> to vector<8x128xf32>
    %cst_22 = arith.constant dense<0.000000e+00> : vector<8x128xf32>
    %100 = tpu.matmul %97, %4, %cst_22 {dimension_numbers = #tpu.dot_dimension_numbers<[1], [0], [0], [1], [0, 0, 1, 1], [], []>} : vector<8x32xf32>, vector<32x128xf32>, vector<8x128xf32> -> vector<8x128xf32>
    %101 = arith.addf %99, %100 : vector<8x128xf32>
    %102 = vector.extract_strided_slice %101 {offsets = [0, 0], sizes = [8, 32], strides = [1, 1]} : vector<8x128xf32> to vector<8x32xf32>
    %103 = arith.negf %102 : vector<8x32xf32>
    %104 = math.exp %103 : vector<8x32xf32>
    %cst_23 = arith.constant 1.000000e+00 : f32
    %105 = vector.broadcast %cst_23 : f32 to vector<8x32xf32>
    %106 = arith.addf %105, %104 : vector<8x32xf32>
    %107 = arith.divf %105, %106 : vector<8x32xf32>
    %108 = vector.extract_strided_slice %101 {offsets = [0, 32], sizes = [8, 32], strides = [1, 1]} : vector<8x128xf32> to vector<8x32xf32>
    %109 = arith.negf %108 : vector<8x32xf32>
    %110 = math.exp %109 : vector<8x32xf32>
    %cst_24 = arith.constant 1.000000e+00 : f32
    %111 = vector.broadcast %cst_24 : f32 to vector<8x32xf32>
    %112 = arith.addf %111, %110 : vector<8x32xf32>
    %113 = arith.divf %111, %112 : vector<8x32xf32>
    %114 = vector.extract_strided_slice %101 {offsets = [0, 64], sizes = [8, 32], strides = [1, 1]} : vector<8x128xf32> to vector<8x32xf32>
    %115 = math.tanh %114 : vector<8x32xf32>
    %116 = vector.extract_strided_slice %101 {offsets = [0, 96], sizes = [8, 32], strides = [1, 1]} : vector<8x128xf32> to vector<8x32xf32>
    %117 = arith.negf %116 : vector<8x32xf32>
    %118 = math.exp %117 : vector<8x32xf32>
    %cst_25 = arith.constant 1.000000e+00 : f32
    %119 = vector.broadcast %cst_25 : f32 to vector<8x32xf32>
    %120 = arith.addf %119, %118 : vector<8x32xf32>
    %121 = arith.divf %119, %120 : vector<8x32xf32>
    %122 = arith.mulf %113, %95 : vector<8x32xf32>
    %123 = arith.mulf %107, %115 : vector<8x32xf32>
    %124 = arith.addf %122, %123 : vector<8x32xf32>
    %125 = math.tanh %124 : vector<8x32xf32>
    %126 = arith.mulf %121, %125 : vector<8x32xf32>
    %127 = vector.extract_strided_slice %10 {offsets = [4, 0, 0], sizes = [1, 8, 128], strides = [1, 1, 1]} : vector<8x8x128xf32> to vector<1x8x128xf32>
    %128 = vector.shape_cast %127 : vector<1x8x128xf32> to vector<8x128xf32>
    %cst_26 = arith.constant dense<0.000000e+00> : vector<8x128xf32>
    %129 = tpu.matmul %126, %4, %cst_26 {dimension_numbers = #tpu.dot_dimension_numbers<[1], [0], [0], [1], [0, 0, 1, 1], [], []>} : vector<8x32xf32>, vector<32x128xf32>, vector<8x128xf32> -> vector<8x128xf32>
    %130 = arith.addf %128, %129 : vector<8x128xf32>
    %131 = vector.extract_strided_slice %130 {offsets = [0, 0], sizes = [8, 32], strides = [1, 1]} : vector<8x128xf32> to vector<8x32xf32>
    %132 = arith.negf %131 : vector<8x32xf32>
    %133 = math.exp %132 : vector<8x32xf32>
    %cst_27 = arith.constant 1.000000e+00 : f32
    %134 = vector.broadcast %cst_27 : f32 to vector<8x32xf32>
    %135 = arith.addf %134, %133 : vector<8x32xf32>
    %136 = arith.divf %134, %135 : vector<8x32xf32>
    %137 = vector.extract_strided_slice %130 {offsets = [0, 32], sizes = [8, 32], strides = [1, 1]} : vector<8x128xf32> to vector<8x32xf32>
    %138 = arith.negf %137 : vector<8x32xf32>
    %139 = math.exp %138 : vector<8x32xf32>
    %cst_28 = arith.constant 1.000000e+00 : f32
    %140 = vector.broadcast %cst_28 : f32 to vector<8x32xf32>
    %141 = arith.addf %140, %139 : vector<8x32xf32>
    %142 = arith.divf %140, %141 : vector<8x32xf32>
    %143 = vector.extract_strided_slice %130 {offsets = [0, 64], sizes = [8, 32], strides = [1, 1]} : vector<8x128xf32> to vector<8x32xf32>
    %144 = math.tanh %143 : vector<8x32xf32>
    %145 = vector.extract_strided_slice %130 {offsets = [0, 96], sizes = [8, 32], strides = [1, 1]} : vector<8x128xf32> to vector<8x32xf32>
    %146 = arith.negf %145 : vector<8x32xf32>
    %147 = math.exp %146 : vector<8x32xf32>
    %cst_29 = arith.constant 1.000000e+00 : f32
    %148 = vector.broadcast %cst_29 : f32 to vector<8x32xf32>
    %149 = arith.addf %148, %147 : vector<8x32xf32>
    %150 = arith.divf %148, %149 : vector<8x32xf32>
    %151 = arith.mulf %142, %124 : vector<8x32xf32>
    %152 = arith.mulf %136, %144 : vector<8x32xf32>
    %153 = arith.addf %151, %152 : vector<8x32xf32>
    %154 = math.tanh %153 : vector<8x32xf32>
    %155 = arith.mulf %150, %154 : vector<8x32xf32>
    %156 = vector.extract_strided_slice %10 {offsets = [5, 0, 0], sizes = [1, 8, 128], strides = [1, 1, 1]} : vector<8x8x128xf32> to vector<1x8x128xf32>
    %157 = vector.shape_cast %156 : vector<1x8x128xf32> to vector<8x128xf32>
    %cst_30 = arith.constant dense<0.000000e+00> : vector<8x128xf32>
    %158 = tpu.matmul %155, %4, %cst_30 {dimension_numbers = #tpu.dot_dimension_numbers<[1], [0], [0], [1], [0, 0, 1, 1], [], []>} : vector<8x32xf32>, vector<32x128xf32>, vector<8x128xf32> -> vector<8x128xf32>
    %159 = arith.addf %157, %158 : vector<8x128xf32>
    %160 = vector.extract_strided_slice %159 {offsets = [0, 0], sizes = [8, 32], strides = [1, 1]} : vector<8x128xf32> to vector<8x32xf32>
    %161 = arith.negf %160 : vector<8x32xf32>
    %162 = math.exp %161 : vector<8x32xf32>
    %cst_31 = arith.constant 1.000000e+00 : f32
    %163 = vector.broadcast %cst_31 : f32 to vector<8x32xf32>
    %164 = arith.addf %163, %162 : vector<8x32xf32>
    %165 = arith.divf %163, %164 : vector<8x32xf32>
    %166 = vector.extract_strided_slice %159 {offsets = [0, 32], sizes = [8, 32], strides = [1, 1]} : vector<8x128xf32> to vector<8x32xf32>
    %167 = arith.negf %166 : vector<8x32xf32>
    %168 = math.exp %167 : vector<8x32xf32>
    %cst_32 = arith.constant 1.000000e+00 : f32
    %169 = vector.broadcast %cst_32 : f32 to vector<8x32xf32>
    %170 = arith.addf %169, %168 : vector<8x32xf32>
    %171 = arith.divf %169, %170 : vector<8x32xf32>
    %172 = vector.extract_strided_slice %159 {offsets = [0, 64], sizes = [8, 32], strides = [1, 1]} : vector<8x128xf32> to vector<8x32xf32>
    %173 = math.tanh %172 : vector<8x32xf32>
    %174 = vector.extract_strided_slice %159 {offsets = [0, 96], sizes = [8, 32], strides = [1, 1]} : vector<8x128xf32> to vector<8x32xf32>
    %175 = arith.negf %174 : vector<8x32xf32>
    %176 = math.exp %175 : vector<8x32xf32>
    %cst_33 = arith.constant 1.000000e+00 : f32
    %177 = vector.broadcast %cst_33 : f32 to vector<8x32xf32>
    %178 = arith.addf %177, %176 : vector<8x32xf32>
    %179 = arith.divf %177, %178 : vector<8x32xf32>
    %180 = arith.mulf %171, %153 : vector<8x32xf32>
    %181 = arith.mulf %165, %173 : vector<8x32xf32>
    %182 = arith.addf %180, %181 : vector<8x32xf32>
    %183 = math.tanh %182 : vector<8x32xf32>
    %184 = arith.mulf %179, %183 : vector<8x32xf32>
    %185 = vector.extract_strided_slice %10 {offsets = [6, 0, 0], sizes = [1, 8, 128], strides = [1, 1, 1]} : vector<8x8x128xf32> to vector<1x8x128xf32>
    %186 = vector.shape_cast %185 : vector<1x8x128xf32> to vector<8x128xf32>
    %cst_34 = arith.constant dense<0.000000e+00> : vector<8x128xf32>
    %187 = tpu.matmul %184, %4, %cst_34 {dimension_numbers = #tpu.dot_dimension_numbers<[1], [0], [0], [1], [0, 0, 1, 1], [], []>} : vector<8x32xf32>, vector<32x128xf32>, vector<8x128xf32> -> vector<8x128xf32>
    %188 = arith.addf %186, %187 : vector<8x128xf32>
    %189 = vector.extract_strided_slice %188 {offsets = [0, 0], sizes = [8, 32], strides = [1, 1]} : vector<8x128xf32> to vector<8x32xf32>
    %190 = arith.negf %189 : vector<8x32xf32>
    %191 = math.exp %190 : vector<8x32xf32>
    %cst_35 = arith.constant 1.000000e+00 : f32
    %192 = vector.broadcast %cst_35 : f32 to vector<8x32xf32>
    %193 = arith.addf %192, %191 : vector<8x32xf32>
    %194 = arith.divf %192, %193 : vector<8x32xf32>
    %195 = vector.extract_strided_slice %188 {offsets = [0, 32], sizes = [8, 32], strides = [1, 1]} : vector<8x128xf32> to vector<8x32xf32>
    %196 = arith.negf %195 : vector<8x32xf32>
    %197 = math.exp %196 : vector<8x32xf32>
    %cst_36 = arith.constant 1.000000e+00 : f32
    %198 = vector.broadcast %cst_36 : f32 to vector<8x32xf32>
    %199 = arith.addf %198, %197 : vector<8x32xf32>
    %200 = arith.divf %198, %199 : vector<8x32xf32>
    %201 = vector.extract_strided_slice %188 {offsets = [0, 64], sizes = [8, 32], strides = [1, 1]} : vector<8x128xf32> to vector<8x32xf32>
    %202 = math.tanh %201 : vector<8x32xf32>
    %203 = vector.extract_strided_slice %188 {offsets = [0, 96], sizes = [8, 32], strides = [1, 1]} : vector<8x128xf32> to vector<8x32xf32>
    %204 = arith.negf %203 : vector<8x32xf32>
    %205 = math.exp %204 : vector<8x32xf32>
    %cst_37 = arith.constant 1.000000e+00 : f32
    %206 = vector.broadcast %cst_37 : f32 to vector<8x32xf32>
    %207 = arith.addf %206, %205 : vector<8x32xf32>
    %208 = arith.divf %206, %207 : vector<8x32xf32>
    %209 = arith.mulf %200, %182 : vector<8x32xf32>
    %210 = arith.mulf %194, %202 : vector<8x32xf32>
    %211 = arith.addf %209, %210 : vector<8x32xf32>
    %212 = math.tanh %211 : vector<8x32xf32>
    %213 = arith.mulf %208, %212 : vector<8x32xf32>
    %214 = vector.extract_strided_slice %10 {offsets = [7, 0, 0], sizes = [1, 8, 128], strides = [1, 1, 1]} : vector<8x8x128xf32> to vector<1x8x128xf32>
    %215 = vector.shape_cast %214 : vector<1x8x128xf32> to vector<8x128xf32>
    %cst_38 = arith.constant dense<0.000000e+00> : vector<8x128xf32>
    %216 = tpu.matmul %213, %4, %cst_38 {dimension_numbers = #tpu.dot_dimension_numbers<[1], [0], [0], [1], [0, 0, 1, 1], [], []>} : vector<8x32xf32>, vector<32x128xf32>, vector<8x128xf32> -> vector<8x128xf32>
    %217 = arith.addf %215, %216 : vector<8x128xf32>
    %218 = vector.extract_strided_slice %217 {offsets = [0, 0], sizes = [8, 32], strides = [1, 1]} : vector<8x128xf32> to vector<8x32xf32>
    %219 = arith.negf %218 : vector<8x32xf32>
    %220 = math.exp %219 : vector<8x32xf32>
    %cst_39 = arith.constant 1.000000e+00 : f32
    %221 = vector.broadcast %cst_39 : f32 to vector<8x32xf32>
    %222 = arith.addf %221, %220 : vector<8x32xf32>
    %223 = arith.divf %221, %222 : vector<8x32xf32>
    %224 = vector.extract_strided_slice %217 {offsets = [0, 32], sizes = [8, 32], strides = [1, 1]} : vector<8x128xf32> to vector<8x32xf32>
    %225 = arith.negf %224 : vector<8x32xf32>
    %226 = math.exp %225 : vector<8x32xf32>
    %cst_40 = arith.constant 1.000000e+00 : f32
    %227 = vector.broadcast %cst_40 : f32 to vector<8x32xf32>
    %228 = arith.addf %227, %226 : vector<8x32xf32>
    %229 = arith.divf %227, %228 : vector<8x32xf32>
    %230 = vector.extract_strided_slice %217 {offsets = [0, 64], sizes = [8, 32], strides = [1, 1]} : vector<8x128xf32> to vector<8x32xf32>
    %231 = math.tanh %230 : vector<8x32xf32>
    %232 = vector.extract_strided_slice %217 {offsets = [0, 96], sizes = [8, 32], strides = [1, 1]} : vector<8x128xf32> to vector<8x32xf32>
    %233 = arith.negf %232 : vector<8x32xf32>
    %234 = math.exp %233 : vector<8x32xf32>
    %cst_41 = arith.constant 1.000000e+00 : f32
    %235 = vector.broadcast %cst_41 : f32 to vector<8x32xf32>
    %236 = arith.addf %235, %234 : vector<8x32xf32>
    %237 = arith.divf %235, %236 : vector<8x32xf32>
    %238 = arith.mulf %229, %211 : vector<8x32xf32>
    %239 = arith.mulf %223, %231 : vector<8x32xf32>
    %240 = arith.addf %238, %239 : vector<8x32xf32>
    %241 = math.tanh %240 : vector<8x32xf32>
    %242 = arith.mulf %237, %241 : vector<8x32xf32>
    %c0_42 = arith.constant 0 : index
    %c0_43 = arith.constant 0 : index
    %243 = vector.load %arg7[%c0_42, %c0_43] : memref<32x128xf32, #tpu.memory_space<vmem>>, vector<32x128xf32>
    %c0_44 = arith.constant 0 : index
    %c0_45 = arith.constant 0 : index
    %244 = vector.load %arg5[%c0_44, %c0_45] : memref<32x128xf32, #tpu.memory_space<vmem>>, vector<32x128xf32>
    %cst_46 = arith.constant dense<0.000000e+00> : vector<64x128xf32>
    %245 = tpu.matmul %1, %244, %cst_46 {dimension_numbers = #tpu.dot_dimension_numbers<[1], [0], [0], [1], [0, 0, 1, 1], [], []>} : vector<64x32xf32>, vector<32x128xf32>, vector<64x128xf32> -> vector<64x128xf32>
    %c0_47 = arith.constant 0 : index
    %c0_48 = arith.constant 0 : index
    %246 = vector.load %arg6[%c0_47, %c0_48] : memref<1x128xf32, #tpu.memory_space<vmem>>, vector<1x128xf32>
    %247 = vector.broadcast %246 : vector<1x128xf32> to vector<64x128xf32>
    %248 = arith.addf %245, %247 : vector<64x128xf32>
    %249 = vector.shape_cast %248 : vector<64x128xf32> to vector<8x8x128xf32>
    %250 = vector.extract_strided_slice %249 {offsets = [0, 0, 0], sizes = [1, 8, 128], strides = [1, 1, 1]} : vector<8x8x128xf32> to vector<1x8x128xf32>
    %251 = vector.shape_cast %250 : vector<1x8x128xf32> to vector<8x128xf32>
    %cst_49 = arith.constant dense<0.000000e+00> : vector<8x128xf32>
    %252 = tpu.matmul %242, %243, %cst_49 {dimension_numbers = #tpu.dot_dimension_numbers<[1], [0], [0], [1], [0, 0, 1, 1], [], []>} : vector<8x32xf32>, vector<32x128xf32>, vector<8x128xf32> -> vector<8x128xf32>
    %253 = arith.addf %251, %252 : vector<8x128xf32>
    %254 = vector.extract_strided_slice %253 {offsets = [0, 0], sizes = [8, 32], strides = [1, 1]} : vector<8x128xf32> to vector<8x32xf32>
    %255 = arith.negf %254 : vector<8x32xf32>
    %256 = math.exp %255 : vector<8x32xf32>
    %cst_50 = arith.constant 1.000000e+00 : f32
    %257 = vector.broadcast %cst_50 : f32 to vector<8x32xf32>
    %258 = arith.addf %257, %256 : vector<8x32xf32>
    %259 = arith.divf %257, %258 : vector<8x32xf32>
    %260 = vector.extract_strided_slice %253 {offsets = [0, 32], sizes = [8, 32], strides = [1, 1]} : vector<8x128xf32> to vector<8x32xf32>
    %261 = arith.negf %260 : vector<8x32xf32>
    %262 = math.exp %261 : vector<8x32xf32>
    %cst_51 = arith.constant 1.000000e+00 : f32
    %263 = vector.broadcast %cst_51 : f32 to vector<8x32xf32>
    %264 = arith.addf %263, %262 : vector<8x32xf32>
    %265 = arith.divf %263, %264 : vector<8x32xf32>
    %266 = vector.extract_strided_slice %253 {offsets = [0, 64], sizes = [8, 32], strides = [1, 1]} : vector<8x128xf32> to vector<8x32xf32>
    %267 = math.tanh %266 : vector<8x32xf32>
    %268 = vector.extract_strided_slice %253 {offsets = [0, 96], sizes = [8, 32], strides = [1, 1]} : vector<8x128xf32> to vector<8x32xf32>
    %269 = arith.negf %268 : vector<8x32xf32>
    %270 = math.exp %269 : vector<8x32xf32>
    %cst_52 = arith.constant 1.000000e+00 : f32
    %271 = vector.broadcast %cst_52 : f32 to vector<8x32xf32>
    %272 = arith.addf %271, %270 : vector<8x32xf32>
    %273 = arith.divf %271, %272 : vector<8x32xf32>
    %274 = arith.mulf %265, %240 : vector<8x32xf32>
    %275 = arith.mulf %259, %267 : vector<8x32xf32>
    %276 = arith.addf %274, %275 : vector<8x32xf32>
    %277 = math.tanh %276 : vector<8x32xf32>
    %278 = arith.mulf %273, %277 : vector<8x32xf32>
    %c0_53 = arith.constant 0 : index
    %c0_54 = arith.constant 0 : index
    %c0_55 = arith.constant 0 : index
    %279 = vector.load %arg8[%c0_53, %c0_54, %c0_55] : memref<8x8x32xf32, #tpu.memory_space<vmem>>, vector<1x8x32xf32>
    %280 = vector.shape_cast %279 : vector<1x8x32xf32> to vector<8x32xf32>
    %281 = vector.shape_cast %278 : vector<8x32xf32> to vector<1x8x32xf32>
    tpu.vector_store %arg8[%c0_53, %c0_54, %c0_55], %281 {strides = array<i32>} : memref<8x8x32xf32, #tpu.memory_space<vmem>>, vector<1x8x32xf32>,
    %282 = vector.extract_strided_slice %249 {offsets = [1, 0, 0], sizes = [1, 8, 128], strides = [1, 1, 1]} : vector<8x8x128xf32> to vector<1x8x128xf32>
    %283 = vector.shape_cast %282 : vector<1x8x128xf32> to vector<8x128xf32>
    %cst_56 = arith.constant dense<0.000000e+00> : vector<8x128xf32>
    %284 = tpu.matmul %278, %243, %cst_56 {dimension_numbers = #tpu.dot_dimension_numbers<[1], [0], [0], [1], [0, 0, 1, 1], [], []>} : vector<8x32xf32>, vector<32x128xf32>, vector<8x128xf32> -> vector<8x128xf32>
    %285 = arith.addf %283, %284 : vector<8x128xf32>
    %286 = vector.extract_strided_slice %285 {offsets = [0, 0], sizes = [8, 32], strides = [1, 1]} : vector<8x128xf32> to vector<8x32xf32>
    %287 = arith.negf %286 : vector<8x32xf32>
    %288 = math.exp %287 : vector<8x32xf32>
    %cst_57 = arith.constant 1.000000e+00 : f32
    %289 = vector.broadcast %cst_57 : f32 to vector<8x32xf32>
    %290 = arith.addf %289, %288 : vector<8x32xf32>
    %291 = arith.divf %289, %290 : vector<8x32xf32>
    %292 = vector.extract_strided_slice %285 {offsets = [0, 32], sizes = [8, 32], strides = [1, 1]} : vector<8x128xf32> to vector<8x32xf32>
    %293 = arith.negf %292 : vector<8x32xf32>
    %294 = math.exp %293 : vector<8x32xf32>
    %cst_58 = arith.constant 1.000000e+00 : f32
    %295 = vector.broadcast %cst_58 : f32 to vector<8x32xf32>
    %296 = arith.addf %295, %294 : vector<8x32xf32>
    %297 = arith.divf %295, %296 : vector<8x32xf32>
    %298 = vector.extract_strided_slice %285 {offsets = [0, 64], sizes = [8, 32], strides = [1, 1]} : vector<8x128xf32> to vector<8x32xf32>
    %299 = math.tanh %298 : vector<8x32xf32>
    %300 = vector.extract_strided_slice %285 {offsets = [0, 96], sizes = [8, 32], strides = [1, 1]} : vector<8x128xf32> to vector<8x32xf32>
    %301 = arith.negf %300 : vector<8x32xf32>
    %302 = math.exp %301 : vector<8x32xf32>
    %cst_59 = arith.constant 1.000000e+00 : f32
    %303 = vector.broadcast %cst_59 : f32 to vector<8x32xf32>
    %304 = arith.addf %303, %302 : vector<8x32xf32>
    %305 = arith.divf %303, %304 : vector<8x32xf32>
    %306 = arith.mulf %297, %276 : vector<8x32xf32>
    %307 = arith.mulf %291, %299 : vector<8x32xf32>
    %308 = arith.addf %306, %307 : vector<8x32xf32>
    %309 = math.tanh %308 : vector<8x32xf32>
    %310 = arith.mulf %305, %309 : vector<8x32xf32>
    %c1 = arith.constant 1 : index
    %c0_60 = arith.constant 0 : index
    %c0_61 = arith.constant 0 : index
    %311 = vector.load %arg8[%c1, %c0_60, %c0_61] : memref<8x8x32xf32, #tpu.memory_space<vmem>>, vector<1x8x32xf32>
    %312 = vector.shape_cast %311 : vector<1x8x32xf32> to vector<8x32xf32>
    %313 = vector.shape_cast %310 : vector<8x32xf32> to vector<1x8x32xf32>
    tpu.vector_store %arg8[%c1, %c0_60, %c0_61], %313 {strides = array<i32>} : memref<8x8x32xf32, #tpu.memory_space<vmem>>, vector<1x8x32xf32>,
    %314 = vector.extract_strided_slice %249 {offsets = [2, 0, 0], sizes = [1, 8, 128], strides = [1, 1, 1]} : vector<8x8x128xf32> to vector<1x8x128xf32>
    %315 = vector.shape_cast %314 : vector<1x8x128xf32> to vector<8x128xf32>
    %cst_62 = arith.constant dense<0.000000e+00> : vector<8x128xf32>
    %316 = tpu.matmul %310, %243, %cst_62 {dimension_numbers = #tpu.dot_dimension_numbers<[1], [0], [0], [1], [0, 0, 1, 1], [], []>} : vector<8x32xf32>, vector<32x128xf32>, vector<8x128xf32> -> vector<8x128xf32>
    %317 = arith.addf %315, %316 : vector<8x128xf32>
    %318 = vector.extract_strided_slice %317 {offsets = [0, 0], sizes = [8, 32], strides = [1, 1]} : vector<8x128xf32> to vector<8x32xf32>
    %319 = arith.negf %318 : vector<8x32xf32>
    %320 = math.exp %319 : vector<8x32xf32>
    %cst_63 = arith.constant 1.000000e+00 : f32
    %321 = vector.broadcast %cst_63 : f32 to vector<8x32xf32>
    %322 = arith.addf %321, %320 : vector<8x32xf32>
    %323 = arith.divf %321, %322 : vector<8x32xf32>
    %324 = vector.extract_strided_slice %317 {offsets = [0, 32], sizes = [8, 32], strides = [1, 1]} : vector<8x128xf32> to vector<8x32xf32>
    %325 = arith.negf %324 : vector<8x32xf32>
    %326 = math.exp %325 : vector<8x32xf32>
    %cst_64 = arith.constant 1.000000e+00 : f32
    %327 = vector.broadcast %cst_64 : f32 to vector<8x32xf32>
    %328 = arith.addf %327, %326 : vector<8x32xf32>
    %329 = arith.divf %327, %328 : vector<8x32xf32>
    %330 = vector.extract_strided_slice %317 {offsets = [0, 64], sizes = [8, 32], strides = [1, 1]} : vector<8x128xf32> to vector<8x32xf32>
    %331 = math.tanh %330 : vector<8x32xf32>
    %332 = vector.extract_strided_slice %317 {offsets = [0, 96], sizes = [8, 32], strides = [1, 1]} : vector<8x128xf32> to vector<8x32xf32>
    %333 = arith.negf %332 : vector<8x32xf32>
    %334 = math.exp %333 : vector<8x32xf32>
    %cst_65 = arith.constant 1.000000e+00 : f32
    %335 = vector.broadcast %cst_65 : f32 to vector<8x32xf32>
    %336 = arith.addf %335, %334 : vector<8x32xf32>
    %337 = arith.divf %335, %336 : vector<8x32xf32>
    %338 = arith.mulf %329, %308 : vector<8x32xf32>
    %339 = arith.mulf %323, %331 : vector<8x32xf32>
    %340 = arith.addf %338, %339 : vector<8x32xf32>
    %341 = math.tanh %340 : vector<8x32xf32>
    %342 = arith.mulf %337, %341 : vector<8x32xf32>
    %c2 = arith.constant 2 : index
    %c0_66 = arith.constant 0 : index
    %c0_67 = arith.constant 0 : index
    %343 = vector.load %arg8[%c2, %c0_66, %c0_67] : memref<8x8x32xf32, #tpu.memory_space<vmem>>, vector<1x8x32xf32>
    %344 = vector.shape_cast %343 : vector<1x8x32xf32> to vector<8x32xf32>
    %345 = vector.shape_cast %342 : vector<8x32xf32> to vector<1x8x32xf32>
    tpu.vector_store %arg8[%c2, %c0_66, %c0_67], %345 {strides = array<i32>} : memref<8x8x32xf32, #tpu.memory_space<vmem>>, vector<1x8x32xf32>,
    %346 = vector.extract_strided_slice %249 {offsets = [3, 0, 0], sizes = [1, 8, 128], strides = [1, 1, 1]} : vector<8x8x128xf32> to vector<1x8x128xf32>
    %347 = vector.shape_cast %346 : vector<1x8x128xf32> to vector<8x128xf32>
    %cst_68 = arith.constant dense<0.000000e+00> : vector<8x128xf32>
    %348 = tpu.matmul %342, %243, %cst_68 {dimension_numbers = #tpu.dot_dimension_numbers<[1], [0], [0], [1], [0, 0, 1, 1], [], []>} : vector<8x32xf32>, vector<32x128xf32>, vector<8x128xf32> -> vector<8x128xf32>
    %349 = arith.addf %347, %348 : vector<8x128xf32>
    %350 = vector.extract_strided_slice %349 {offsets = [0, 0], sizes = [8, 32], strides = [1, 1]} : vector<8x128xf32> to vector<8x32xf32>
    %351 = arith.negf %350 : vector<8x32xf32>
    %352 = math.exp %351 : vector<8x32xf32>
    %cst_69 = arith.constant 1.000000e+00 : f32
    %353 = vector.broadcast %cst_69 : f32 to vector<8x32xf32>
    %354 = arith.addf %353, %352 : vector<8x32xf32>
    %355 = arith.divf %353, %354 : vector<8x32xf32>
    %356 = vector.extract_strided_slice %349 {offsets = [0, 32], sizes = [8, 32], strides = [1, 1]} : vector<8x128xf32> to vector<8x32xf32>
    %357 = arith.negf %356 : vector<8x32xf32>
    %358 = math.exp %357 : vector<8x32xf32>
    %cst_70 = arith.constant 1.000000e+00 : f32
    %359 = vector.broadcast %cst_70 : f32 to vector<8x32xf32>
    %360 = arith.addf %359, %358 : vector<8x32xf32>
    %361 = arith.divf %359, %360 : vector<8x32xf32>
    %362 = vector.extract_strided_slice %349 {offsets = [0, 64], sizes = [8, 32], strides = [1, 1]} : vector<8x128xf32> to vector<8x32xf32>
    %363 = math.tanh %362 : vector<8x32xf32>
    %364 = vector.extract_strided_slice %349 {offsets = [0, 96], sizes = [8, 32], strides = [1, 1]} : vector<8x128xf32> to vector<8x32xf32>
    %365 = arith.negf %364 : vector<8x32xf32>
    %366 = math.exp %365 : vector<8x32xf32>
    %cst_71 = arith.constant 1.000000e+00 : f32
    %367 = vector.broadcast %cst_71 : f32 to vector<8x32xf32>
    %368 = arith.addf %367, %366 : vector<8x32xf32>
    %369 = arith.divf %367, %368 : vector<8x32xf32>
    %370 = arith.mulf %361, %340 : vector<8x32xf32>
    %371 = arith.mulf %355, %363 : vector<8x32xf32>
    %372 = arith.addf %370, %371 : vector<8x32xf32>
    %373 = math.tanh %372 : vector<8x32xf32>
    %374 = arith.mulf %369, %373 : vector<8x32xf32>
    %c3 = arith.constant 3 : index
    %c0_72 = arith.constant 0 : index
    %c0_73 = arith.constant 0 : index
    %375 = vector.load %arg8[%c3, %c0_72, %c0_73] : memref<8x8x32xf32, #tpu.memory_space<vmem>>, vector<1x8x32xf32>
    %376 = vector.shape_cast %375 : vector<1x8x32xf32> to vector<8x32xf32>
    %377 = vector.shape_cast %374 : vector<8x32xf32> to vector<1x8x32xf32>
    tpu.vector_store %arg8[%c3, %c0_72, %c0_73], %377 {strides = array<i32>} : memref<8x8x32xf32, #tpu.memory_space<vmem>>, vector<1x8x32xf32>,
    %378 = vector.extract_strided_slice %249 {offsets = [4, 0, 0], sizes = [1, 8, 128], strides = [1, 1, 1]} : vector<8x8x128xf32> to vector<1x8x128xf32>
    %379 = vector.shape_cast %378 : vector<1x8x128xf32> to vector<8x128xf32>
    %cst_74 = arith.constant dense<0.000000e+00> : vector<8x128xf32>
    %380 = tpu.matmul %374, %243, %cst_74 {dimension_numbers = #tpu.dot_dimension_numbers<[1], [0], [0], [1], [0, 0, 1, 1], [], []>} : vector<8x32xf32>, vector<32x128xf32>, vector<8x128xf32> -> vector<8x128xf32>
    %381 = arith.addf %379, %380 : vector<8x128xf32>
    %382 = vector.extract_strided_slice %381 {offsets = [0, 0], sizes = [8, 32], strides = [1, 1]} : vector<8x128xf32> to vector<8x32xf32>
    %383 = arith.negf %382 : vector<8x32xf32>
    %384 = math.exp %383 : vector<8x32xf32>
    %cst_75 = arith.constant 1.000000e+00 : f32
    %385 = vector.broadcast %cst_75 : f32 to vector<8x32xf32>
    %386 = arith.addf %385, %384 : vector<8x32xf32>
    %387 = arith.divf %385, %386 : vector<8x32xf32>
    %388 = vector.extract_strided_slice %381 {offsets = [0, 32], sizes = [8, 32], strides = [1, 1]} : vector<8x128xf32> to vector<8x32xf32>
    %389 = arith.negf %388 : vector<8x32xf32>
    %390 = math.exp %389 : vector<8x32xf32>
    %cst_76 = arith.constant 1.000000e+00 : f32
    %391 = vector.broadcast %cst_76 : f32 to vector<8x32xf32>
    %392 = arith.addf %391, %390 : vector<8x32xf32>
    %393 = arith.divf %391, %392 : vector<8x32xf32>
    %394 = vector.extract_strided_slice %381 {offsets = [0, 64], sizes = [8, 32], strides = [1, 1]} : vector<8x128xf32> to vector<8x32xf32>
    %395 = math.tanh %394 : vector<8x32xf32>
    %396 = vector.extract_strided_slice %381 {offsets = [0, 96], sizes = [8, 32], strides = [1, 1]} : vector<8x128xf32> to vector<8x32xf32>
    %397 = arith.negf %396 : vector<8x32xf32>
    %398 = math.exp %397 : vector<8x32xf32>
    %cst_77 = arith.constant 1.000000e+00 : f32
    %399 = vector.broadcast %cst_77 : f32 to vector<8x32xf32>
    %400 = arith.addf %399, %398 : vector<8x32xf32>
    %401 = arith.divf %399, %400 : vector<8x32xf32>
    %402 = arith.mulf %393, %372 : vector<8x32xf32>
    %403 = arith.mulf %387, %395 : vector<8x32xf32>
    %404 = arith.addf %402, %403 : vector<8x32xf32>
    %405 = math.tanh %404 : vector<8x32xf32>
    %406 = arith.mulf %401, %405 : vector<8x32xf32>
    %c4 = arith.constant 4 : index
    %c0_78 = arith.constant 0 : index
    %c0_79 = arith.constant 0 : index
    %407 = vector.load %arg8[%c4, %c0_78, %c0_79] : memref<8x8x32xf32, #tpu.memory_space<vmem>>, vector<1x8x32xf32>
    %408 = vector.shape_cast %407 : vector<1x8x32xf32> to vector<8x32xf32>
    %409 = vector.shape_cast %406 : vector<8x32xf32> to vector<1x8x32xf32>
    tpu.vector_store %arg8[%c4, %c0_78, %c0_79], %409 {strides = array<i32>} : memref<8x8x32xf32, #tpu.memory_space<vmem>>, vector<1x8x32xf32>,
    %410 = vector.extract_strided_slice %249 {offsets = [5, 0, 0], sizes = [1, 8, 128], strides = [1, 1, 1]} : vector<8x8x128xf32> to vector<1x8x128xf32>
    %411 = vector.shape_cast %410 : vector<1x8x128xf32> to vector<8x128xf32>
    %cst_80 = arith.constant dense<0.000000e+00> : vector<8x128xf32>
    %412 = tpu.matmul %406, %243, %cst_80 {dimension_numbers = #tpu.dot_dimension_numbers<[1], [0], [0], [1], [0, 0, 1, 1], [], []>} : vector<8x32xf32>, vector<32x128xf32>, vector<8x128xf32> -> vector<8x128xf32>
    %413 = arith.addf %411, %412 : vector<8x128xf32>
    %414 = vector.extract_strided_slice %413 {offsets = [0, 0], sizes = [8, 32], strides = [1, 1]} : vector<8x128xf32> to vector<8x32xf32>
    %415 = arith.negf %414 : vector<8x32xf32>
    %416 = math.exp %415 : vector<8x32xf32>
    %cst_81 = arith.constant 1.000000e+00 : f32
    %417 = vector.broadcast %cst_81 : f32 to vector<8x32xf32>
    %418 = arith.addf %417, %416 : vector<8x32xf32>
    %419 = arith.divf %417, %418 : vector<8x32xf32>
    %420 = vector.extract_strided_slice %413 {offsets = [0, 32], sizes = [8, 32], strides = [1, 1]} : vector<8x128xf32> to vector<8x32xf32>
    %421 = arith.negf %420 : vector<8x32xf32>
    %422 = math.exp %421 : vector<8x32xf32>
    %cst_82 = arith.constant 1.000000e+00 : f32
    %423 = vector.broadcast %cst_82 : f32 to vector<8x32xf32>
    %424 = arith.addf %423, %422 : vector<8x32xf32>
    %425 = arith.divf %423, %424 : vector<8x32xf32>
    %426 = vector.extract_strided_slice %413 {offsets = [0, 64], sizes = [8, 32], strides = [1, 1]} : vector<8x128xf32> to vector<8x32xf32>
    %427 = math.tanh %426 : vector<8x32xf32>
    %428 = vector.extract_strided_slice %413 {offsets = [0, 96], sizes = [8, 32], strides = [1, 1]} : vector<8x128xf32> to vector<8x32xf32>
    %429 = arith.negf %428 : vector<8x32xf32>
    %430 = math.exp %429 : vector<8x32xf32>
    %cst_83 = arith.constant 1.000000e+00 : f32
    %431 = vector.broadcast %cst_83 : f32 to vector<8x32xf32>
    %432 = arith.addf %431, %430 : vector<8x32xf32>
    %433 = arith.divf %431, %432 : vector<8x32xf32>
    %434 = arith.mulf %425, %404 : vector<8x32xf32>
    %435 = arith.mulf %419, %427 : vector<8x32xf32>
    %436 = arith.addf %434, %435 : vector<8x32xf32>
    %437 = math.tanh %436 : vector<8x32xf32>
    %438 = arith.mulf %433, %437 : vector<8x32xf32>
    %c5 = arith.constant 5 : index
    %c0_84 = arith.constant 0 : index
    %c0_85 = arith.constant 0 : index
    %439 = vector.load %arg8[%c5, %c0_84, %c0_85] : memref<8x8x32xf32, #tpu.memory_space<vmem>>, vector<1x8x32xf32>
    %440 = vector.shape_cast %439 : vector<1x8x32xf32> to vector<8x32xf32>
    %441 = vector.shape_cast %438 : vector<8x32xf32> to vector<1x8x32xf32>
    tpu.vector_store %arg8[%c5, %c0_84, %c0_85], %441 {strides = array<i32>} : memref<8x8x32xf32, #tpu.memory_space<vmem>>, vector<1x8x32xf32>,
    %442 = vector.extract_strided_slice %249 {offsets = [6, 0, 0], sizes = [1, 8, 128], strides = [1, 1, 1]} : vector<8x8x128xf32> to vector<1x8x128xf32>
    %443 = vector.shape_cast %442 : vector<1x8x128xf32> to vector<8x128xf32>
    %cst_86 = arith.constant dense<0.000000e+00> : vector<8x128xf32>
    %444 = tpu.matmul %438, %243, %cst_86 {dimension_numbers = #tpu.dot_dimension_numbers<[1], [0], [0], [1], [0, 0, 1, 1], [], []>} : vector<8x32xf32>, vector<32x128xf32>, vector<8x128xf32> -> vector<8x128xf32>
    %445 = arith.addf %443, %444 : vector<8x128xf32>
    %446 = vector.extract_strided_slice %445 {offsets = [0, 0], sizes = [8, 32], strides = [1, 1]} : vector<8x128xf32> to vector<8x32xf32>
    %447 = arith.negf %446 : vector<8x32xf32>
    %448 = math.exp %447 : vector<8x32xf32>
    %cst_87 = arith.constant 1.000000e+00 : f32
    %449 = vector.broadcast %cst_87 : f32 to vector<8x32xf32>
    %450 = arith.addf %449, %448 : vector<8x32xf32>
    %451 = arith.divf %449, %450 : vector<8x32xf32>
    %452 = vector.extract_strided_slice %445 {offsets = [0, 32], sizes = [8, 32], strides = [1, 1]} : vector<8x128xf32> to vector<8x32xf32>
    %453 = arith.negf %452 : vector<8x32xf32>
    %454 = math.exp %453 : vector<8x32xf32>
    %cst_88 = arith.constant 1.000000e+00 : f32
    %455 = vector.broadcast %cst_88 : f32 to vector<8x32xf32>
    %456 = arith.addf %455, %454 : vector<8x32xf32>
    %457 = arith.divf %455, %456 : vector<8x32xf32>
    %458 = vector.extract_strided_slice %445 {offsets = [0, 64], sizes = [8, 32], strides = [1, 1]} : vector<8x128xf32> to vector<8x32xf32>
    %459 = math.tanh %458 : vector<8x32xf32>
    %460 = vector.extract_strided_slice %445 {offsets = [0, 96], sizes = [8, 32], strides = [1, 1]} : vector<8x128xf32> to vector<8x32xf32>
    %461 = arith.negf %460 : vector<8x32xf32>
    %462 = math.exp %461 : vector<8x32xf32>
    %cst_89 = arith.constant 1.000000e+00 : f32
    %463 = vector.broadcast %cst_89 : f32 to vector<8x32xf32>
    %464 = arith.addf %463, %462 : vector<8x32xf32>
    %465 = arith.divf %463, %464 : vector<8x32xf32>
    %466 = arith.mulf %457, %436 : vector<8x32xf32>
    %467 = arith.mulf %451, %459 : vector<8x32xf32>
    %468 = arith.addf %466, %467 : vector<8x32xf32>
    %469 = math.tanh %468 : vector<8x32xf32>
    %470 = arith.mulf %465, %469 : vector<8x32xf32>
    %c6 = arith.constant 6 : index
    %c0_90 = arith.constant 0 : index
    %c0_91 = arith.constant 0 : index
    %471 = vector.load %arg8[%c6, %c0_90, %c0_91] : memref<8x8x32xf32, #tpu.memory_space<vmem>>, vector<1x8x32xf32>
    %472 = vector.shape_cast %471 : vector<1x8x32xf32> to vector<8x32xf32>
    %473 = vector.shape_cast %470 : vector<8x32xf32> to vector<1x8x32xf32>
    tpu.vector_store %arg8[%c6, %c0_90, %c0_91], %473 {strides = array<i32>} : memref<8x8x32xf32, #tpu.memory_space<vmem>>, vector<1x8x32xf32>,
    %474 = vector.extract_strided_slice %249 {offsets = [7, 0, 0], sizes = [1, 8, 128], strides = [1, 1, 1]} : vector<8x8x128xf32> to vector<1x8x128xf32>
    %475 = vector.shape_cast %474 : vector<1x8x128xf32> to vector<8x128xf32>
    %cst_92 = arith.constant dense<0.000000e+00> : vector<8x128xf32>
    %476 = tpu.matmul %470, %243, %cst_92 {dimension_numbers = #tpu.dot_dimension_numbers<[1], [0], [0], [1], [0, 0, 1, 1], [], []>} : vector<8x32xf32>, vector<32x128xf32>, vector<8x128xf32> -> vector<8x128xf32>
    %477 = arith.addf %475, %476 : vector<8x128xf32>
    %478 = vector.extract_strided_slice %477 {offsets = [0, 0], sizes = [8, 32], strides = [1, 1]} : vector<8x128xf32> to vector<8x32xf32>
    %479 = arith.negf %478 : vector<8x32xf32>
    %480 = math.exp %479 : vector<8x32xf32>
    %cst_93 = arith.constant 1.000000e+00 : f32
    %481 = vector.broadcast %cst_93 : f32 to vector<8x32xf32>
    %482 = arith.addf %481, %480 : vector<8x32xf32>
    %483 = arith.divf %481, %482 : vector<8x32xf32>
    %484 = vector.extract_strided_slice %477 {offsets = [0, 32], sizes = [8, 32], strides = [1, 1]} : vector<8x128xf32> to vector<8x32xf32>
    %485 = arith.negf %484 : vector<8x32xf32>
    %486 = math.exp %485 : vector<8x32xf32>
    %cst_94 = arith.constant 1.000000e+00 : f32
    %487 = vector.broadcast %cst_94 : f32 to vector<8x32xf32>
    %488 = arith.addf %487, %486 : vector<8x32xf32>
    %489 = arith.divf %487, %488 : vector<8x32xf32>
    %490 = vector.extract_strided_slice %477 {offsets = [0, 64], sizes = [8, 32], strides = [1, 1]} : vector<8x128xf32> to vector<8x32xf32>
    %491 = math.tanh %490 : vector<8x32xf32>
    %492 = vector.extract_strided_slice %477 {offsets = [0, 96], sizes = [8, 32], strides = [1, 1]} : vector<8x128xf32> to vector<8x32xf32>
    %493 = arith.negf %492 : vector<8x32xf32>
    %494 = math.exp %493 : vector<8x32xf32>
    %cst_95 = arith.constant 1.000000e+00 : f32
    %495 = vector.broadcast %cst_95 : f32 to vector<8x32xf32>
    %496 = arith.addf %495, %494 : vector<8x32xf32>
    %497 = arith.divf %495, %496 : vector<8x32xf32>
    %498 = arith.mulf %489, %468 : vector<8x32xf32>
    %499 = arith.mulf %483, %491 : vector<8x32xf32>
    %500 = arith.addf %498, %499 : vector<8x32xf32>
    %501 = math.tanh %500 : vector<8x32xf32>
    %502 = arith.mulf %497, %501 : vector<8x32xf32>
    %c7 = arith.constant 7 : index
    %c0_96 = arith.constant 0 : index
    %c0_97 = arith.constant 0 : index
    %503 = vector.load %arg8[%c7, %c0_96, %c0_97] : memref<8x8x32xf32, #tpu.memory_space<vmem>>, vector<1x8x32xf32>
    %504 = vector.shape_cast %503 : vector<1x8x32xf32> to vector<8x32xf32>
    %505 = vector.shape_cast %502 : vector<8x32xf32> to vector<1x8x32xf32>
    tpu.vector_store %arg8[%c7, %c0_96, %c0_97], %505 {strides = array<i32>} : memref<8x8x32xf32, #tpu.memory_space<vmem>>, vector<1x8x32xf32>,
    return
  }
  func.func @transform_0(%arg0: i32) -> (i32, i32, i32) {
    %c0_i32 = arith.constant 0 : i32
    %c0_i32_0 = arith.constant 0 : i32
    %c0_i32_1 = arith.constant 0 : i32
    return %c0_i32, %arg0, %c0_i32_0 : i32, i32, i32
  }
  func.func @transform_1(%arg0: i32) -> (i32, i32) {
    %c0_i32 = arith.constant 0 : i32
    %c0_i32_0 = arith.constant 0 : i32
    %c0_i32_1 = arith.constant 0 : i32
    return %c0_i32, %c0_i32_0 : i32, i32
  }
  func.func @transform_2(%arg0: i32) -> (i32, i32) {
    %c0_i32 = arith.constant 0 : i32
    %c0_i32_0 = arith.constant 0 : i32
    %c0_i32_1 = arith.constant 0 : i32
    return %c0_i32, %c0_i32_0 : i32, i32
  }
  func.func @transform_3(%arg0: i32) -> (i32, i32) {
    %c0_i32 = arith.constant 0 : i32
    %c0_i32_0 = arith.constant 0 : i32
    %c0_i32_1 = arith.constant 0 : i32
    return %c0_i32, %c0_i32_0 : i32, i32
  }
  func.func @transform_4(%arg0: i32) -> (i32, i32) {
    %c0_i32 = arith.constant 0 : i32
    %c0_i32_0 = arith.constant 0 : i32
    %c0_i32_1 = arith.constant 0 : i32
    return %c0_i32, %c0_i32_0 : i32, i32
  }
  func.func @transform_5(%arg0: i32) -> (i32, i32) {
    %c0_i32 = arith.constant 0 : i32
    %c0_i32_0 = arith.constant 0 : i32
    %c0_i32_1 = arith.constant 0 : i32
    return %c0_i32, %c0_i32_0 : i32, i32
  }
  func.func @transform_6(%arg0: i32) -> (i32, i32) {
    %c0_i32 = arith.constant 0 : i32
    %c0_i32_0 = arith.constant 0 : i32
    %c0_i32_1 = arith.constant 0 : i32
    return %c0_i32, %c0_i32_0 : i32, i32
  }
  func.func @transform_7(%arg0: i32) -> (i32, i32, i32) {
    %c0_i32 = arith.constant 0 : i32
    %c0_i32_0 = arith.constant 0 : i32
    %c0_i32_1 = arith.constant 0 : i32
    return %c0_i32, %arg0, %c0_i32_0 : i32, i32, i32
  }
}

</mosaic_0001>

<bundles_post_ra>
// kernel: seq2seq_lstm_forward.3
= control target key start
LH: loop header
LB: loop body
LE: loop exit
PB: predicated region body
PF: predicated region fallthrough
CT: control target
= control target key end

     0   :  { %vm33_vm0 = vcmask 261120   ;;  %s315_s1 = inlined_call_operand.vmem [shape: f32[32,128], index: 1, kind: input, shape index: {}]   ;;  %s316_s0 = inlined_call_operand.vmem [shape: f32[64,32], index: 0, kind: input, shape index: {}]   ;;  %s317_s2 = inlined_call_operand.vmem [shape: f32[1,128], index: 2, kind: input, shape index: {}]   ;;  %s318_s3 = inlined_call_operand.vmem [shape: f32[64,128], index: 3, kind: output, shape index: {}]  }
   0x1   :  { %v25_v0 = vld [vmem:[%s315_s1 + $0x18] sm:$0xff]  ;;  %v24_v1 = vld [vmem:[%s315_s1 + $0x10] sm:$0xff]  ;;  %v23_v2 = vld [vmem:[%s315_s1 + $0x8] sm:$0xff] }
   0x2   :  { %196 = vmatprep.subr.mxu0 %v25_v0  ;;  %216 = vmatprep.subr.mxu1 %v25_v0  ;;  %v22_v3 = vld [vmem:[%s315_s1] sm:$0xff]  ;;  %v15_v6 = vld [vmem:[%s316_s0 + $0x8] sm:$0xff]  ;;  %v16_v8 = vld [vmem:[%s316_s0 + $0x10] sm:$0xff] }
   0x3   :  { %197 = vmatpush3.msra.mxu0 %v25_v0  ;;  %220 = vmatpush3.msra.mxu1 %v25_v0  ;;  %v14_v4 = vld [vmem:[%s316_s0] sm:$0xff]  ;;  %v19_v7 = vld [vmem:[%s316_s0 + $0x28] sm:$0xff]  ;;  %v20_v9 = vld [vmem:[%s316_s0 + $0x30] sm:$0xff] }
   0x4   :  { %198 = vmatprep.subr.mxu0 %v24_v1  ;;  %217 = vmatprep.subr.mxu1 %v24_v1  ;;  %v18_v5 = vld [vmem:[%s316_s0 + $0x20] sm:$0xff]  ;;  %v17_v10 = vld [vmem:[%s316_s0 + $0x18] sm:$0xff] }
   0x5   :  { %199 = vmatpush3.msra.mxu0 %v24_v1  ;;  %221 = vmatpush3.msra.mxu1 %v24_v1  ;;  %v21_v11 = vld [vmem:[%s316_s0 + $0x38] sm:$0xff]  ;;  %v175_v12 = vld [vmem:[%s317_s2] ss:$0 sm:$0xff] }
   0x6   :  { %200 = vmatprep.subr.mxu0 %v23_v2  ;;  %218 = vmatprep.subr.mxu1 %v23_v2 }
   0x7   :  { %201 = vmatpush3.msra.mxu0 %v23_v2  ;;  %222 = vmatpush3.msra.mxu1 %v23_v2 }
   0x8   :  { %202 = vmatprep.subr.mxu0 %v22_v3  ;;  %219 = vmatprep.subr.mxu1 %v22_v3 }
   0x9   :  { %203 = vmatpush3.msra.mxu0 %v22_v3  ;;  %223 = vmatpush3.msra.mxu1 %v22_v3 }
   0xa   :  { %204 = vmatprep.mubr.msk.f32.mxu0 %vm33_vm0, %v14_v4  ;;  %210 = vmatprep.mubr.msk.f32.mxu1 %vm33_vm0, %v18_v5 }
   0xb   :  { %205 = vmatmul.mubr.msk.f32.vlgmr.msra.gmra.mxu0 %vm33_vm0, %v15_v6  ;;  %211 = vmatmul.mubr.msk.f32.vlgmr.msra.gmra.mxu1 %vm33_vm0, %v19_v7 }
   0xc   :  { %207 = vmatprep.mubr.msk.f32.mxu0 %vm33_vm0, %v16_v8  ;;  %213 = vmatprep.mubr.msk.f32.mxu1 %vm33_vm0, %v20_v9 }
   0xf   :  { %208 = vmatmul.mubr.msk.f32.gmra.mxu0 %vm33_vm0, %v17_v10  ;;  %214 = vmatmul.mubr.msk.f32.gmra.mxu1 %vm33_vm0, %v21_v11 }
  0xcb   :  { %v206_v13 = vpop.f32.mrf.mxu0  ;;  %v212_v14 = vpop.f32.mrf.mxu1 }
  0xcc   :  { %v130_v15 = vadd.f32 %v206_v13, %v175_v12  ;;  %v150_v16 = vadd.f32 %v212_v14, %v175_v12 }
  0xcd   :  { %v124_v17 = vpop.f32.mrf.mxu0  ;;  %v144_v18 = vpop.f32.mrf.mxu1 }
  0xce   :  { %164 = vst [vmem:[%s318_s3 + $0x8] sm:$0xff] %v130_v15  ;;  %168 = vst [vmem:[%s318_s3 + $0x28] sm:$0xff] %v150_v16  ;;  %v125_v19 = vadd.f32 %v175_v12, %v124_v17  ;;  %v145_v20 = vadd.f32 %v175_v12, %v144_v18 }
  0xcf   :  { %v209_v21 = vpop.f32.mrf.mxu0  ;;  %v215_v22 = vpop.f32.mrf.mxu1 }
  0xd0   :  { %163 = vst [vmem:[%s318_s3] sm:$0xff] %v125_v19  ;;  %167 = vst [vmem:[%s318_s3 + $0x20] sm:$0xff] %v145_v20  ;;  %v140_v23 = vadd.f32 %v209_v21, %v175_v12  ;;  %v160_v24 = vadd.f32 %v215_v22, %v175_v12 }
  0xd1   :  { %v134_v25 = vpop.f32.mrf.mxu0  ;;  %v154_v26 = vpop.f32.mrf.mxu1 }
  0xd2   :  { %166 = vst [vmem:[%s318_s3 + $0x18] sm:$0xff] %v140_v23  ;;  %170 = vst [vmem:[%s318_s3 + $0x38] sm:$0xff] %v160_v24  ;;  %v135_v27 = vadd.f32 %v175_v12, %v134_v25  ;;  %v155_v28 = vadd.f32 %v175_v12, %v154_v26 }
  0xd4   :  { %165 = vst [vmem:[%s318_s3 + $0x10] sm:$0xff] %v135_v27  ;;  %169 = vst [vmem:[%s318_s3 + $0x30] sm:$0xff] %v155_v28 }

// kernel: seq2seq_lstm_forward.2
= control target key start
LH: loop header
LB: loop body
LE: loop exit
PB: predicated region body
PF: predicated region fallthrough
CT: control target
= control target key end

     0   :  { %v2435_v2 = vmov 0.0   ;;  %vm2436_vm0 = vmmov 0   ;;  %vm49_vm1 = vcmask 261120   ;;  %s2437_s21 = smov 64   ;;  %s2941_s1 = inlined_call_operand.vmem [shape: f32[32,128], index: 1, kind: input, shape index: {}]   ;;  %s2942_s3 = inlined_call_operand.vmem [shape: f32[32,128], index: 3, kind: input, shape index: {}]   ;;  %s2943_s0 = inlined_call_operand.vmem [shape: f32[8,8,32], index: 0, kind: input, shape index: {}]   ;;  %s2944_s2 = inlined_call_operand.vmem [shape: f32[1,128], index: 2, kind: input, shape index: {}]   ;;  %s2945_s4 = inlined_call_operand.vmem [shape: f32[32,128], index: 4, kind: input, shape index: {}]   ;;  %s2946_s6 = inlined_call_operand.vmem [shape: f32[32,128], index: 6, kind: input, shape index: {}]   ;;  %s2947_s5 = inlined_call_operand.vmem [shape: f32[1,128], index: 5, kind: input, shape index: {}]   ;;  %s2948_s7 = inlined_call_operand.vmem [shape: f32[8,8,32], index: 7, kind: output, shape index: {}]  }
   0x1   :  { %v41_v0 = vld [vmem:[%s2941_s1 + $0x18] sm:$0xff]  ;;  %v40_v1 = vld [vmem:[%s2941_s1 + $0x10] sm:$0xff]  ;;  %2107 = vmatprep.subr.mxu1 %v2435_v2  ;;  %2115 = vmatprep.mubr.msk.f32.mxu1 %vm2436_vm0, %v2435_v2  ;;  %v39_v5 = vld [vmem:[%s2941_s1 + $0x8] sm:$0xff] }
   0x2   :  { %v2489_v3 = vld [vmem:[%s2942_s3 + $0x18] sm:$0xff]  ;;  %2087 = vmatprep.subr.mxu0 %v41_v0  ;;  %v2497_v4 = vld [vmem:[%s2942_s3 + $0x10] sm:$0xff]  ;;  %v2506_v6 = vld [vmem:[%s2943_s0] sm:$0xff] }
   0x3   :  { %2108 = vmatpush3.msra.mxu1 %v2489_v3  ;;  %2088 = vmatpush3.msra.mxu0 %v41_v0  ;;  %v2512_v7 = vld [vmem:[%s2942_s3 + $0x8] sm:$0xff]  ;;  %v38_v8 = vld [vmem:[%s2941_s1] sm:$0xff]  ;;  %v2583_v46 = vld [vmem:[%s2943_s0 + $0x10] sm:$0xff] }
   0x4   :  { %2109 = vmatprep.subr.mxu1 %v2435_v2  ;;  %2089 = vmatprep.subr.mxu0 %v40_v1  ;;  %v2523_v9 = vld [vmem:[%s2942_s3] sm:$0xff]  ;;  %v2529_v10 = vld [vmem:[%s2943_s0 + $0x8] sm:$0xff]  ;;  %v2588_v47 = vld [vmem:[%s2943_s0 + $0x18] sm:$0xff] }
   0x5   :  { %2110 = vmatpush3.msra.mxu1 %v2497_v4  ;;  %2090 = vmatpush3.msra.mxu0 %v40_v1  ;;  %v2559_v13 = vld [vmem:[%s2944_s2] ss:$0 sm:$0xff]  ;;  %s2438_s2 = smov 32   ;;  %v2604_v49 = vld [vmem:[%s2943_s0 + $0x28] sm:$0xff]  ;;  %v2609_v50 = vld [vmem:[%s2943_s0 + $0x30] sm:$0xff] }
   0x6   :  { %2111 = vmatprep.subr.mxu1 %v2435_v2  ;;  %2091 = vmatprep.subr.mxu0 %v39_v5  ;;  %v2593_v48 = vld [vmem:[%s2943_s0 + $0x20] sm:$0xff]  ;;  %v2618_v51 = vld [vmem:[%s2943_s0 + $0x38] sm:$0xff] }
   0x7   :  { %2095 = vmatprep.mubr.msk.f32.mxu0 %vm49_vm1, %v2506_v6  ;;  %2092 = vmatpush3.msra.mxu0 %v39_v5 }
   0x8   :  { %2112 = vmatpush3.msra.mxu1 %v2512_v7  ;;  %2093 = vmatprep.subr.mxu0 %v38_v8 }
   0x9   :  { %2113 = vmatprep.subr.mxu1 %v2435_v2  ;;  %2094 = vmatpush3.msra.mxu0 %v38_v8 }
   0xa   :  { %2114 = vmatpush3.msra.mxu1 %v2523_v9  ;;  %2096 = vmatmul.mubr.msk.f32.vlgmr.msra.gmra.mxu0 %vm49_vm1, %v2529_v10 }
   0xb   :  { %2116 = vmatmul.mubr.f32.vlgmr.msra.gmra.mxu1 %v2435_v2  ;;  %2118 = vmatprep.subr.mxu1 %v2435_v2 }
   0xc   :  { %2126 = vmatprep.mubr.msk.f32.mxu1 %vm2436_vm0, %v2435_v2  ;;  %2119 = vmatpush3.msra.mxu1 %v2489_v3 }
   0xd   :  { %2129 = vmatprep.subr.mxu0 %v2435_v2  ;;  %2120 = vmatprep.subr.mxu1 %v2435_v2 }
   0xe   :  { %2130 = vmatpush3.msra.mxu0 %v2489_v3  ;;  %2121 = vmatpush3.msra.mxu1 %v2497_v4 }
   0xf   :  { %2131 = vmatprep.subr.mxu0 %v2435_v2  ;;  %2122 = vmatprep.subr.mxu1 %v2435_v2 }
  0x10   :  { %2132 = vmatpush3.msra.mxu0 %v2497_v4  ;;  %2123 = vmatpush3.msra.mxu1 %v2512_v7 }
  0x11   :  { %2133 = vmatprep.subr.mxu0 %v2435_v2  ;;  %2124 = vmatprep.subr.mxu1 %v2435_v2 }
  0x12   :  { %2134 = vmatpush3.msra.mxu0 %v2512_v7  ;;  %2125 = vmatpush3.msra.mxu1 %v2523_v9 }
  0x13   :  { %2135 = vmatprep.subr.mxu0 %v2435_v2  ;;  %2140 = vmatprep.subr.mxu1 %v2435_v2 }
  0x14   :  { %2136 = vmatpush3.msra.mxu0 %v2523_v9  ;;  %2098 = vmatprep.mubr.msk.f32.mxu0 %vm49_vm1, %v2583_v46 }
  0x15   :  { %2151 = vmatprep.subr.mxu0 %v2435_v2  ;;  %2099 = vmatmul.mubr.msk.f32.gmra.mxu0 %vm49_vm1, %v2588_v47 }
  0x16   :  { %2101 = vmatprep.mubr.msk.f32.mxu0 %vm49_vm1, %v2593_v48 }
  0x19   :  { %2102 = vmatmul.mubr.msk.f32.gmra.mxu0 %vm49_vm1, %v2604_v49 }
  0x1a   :  { %2104 = vmatprep.mubr.msk.f32.mxu0 %vm49_vm1, %v2609_v50 }
  0x1d   :  { %2105 = vmatmul.mubr.msk.f32.gmra.mxu0 %vm49_vm1, %v2618_v51 }
  0x1e   :  { %2137 = vmatprep.mubr.msk.f32.mxu0 %vm2436_vm0, %v2435_v2 }
  0xca   :  { %v2097_v11 = vpop.f32.mrf.mxu0 }
  0xcb   :  { %v248_v12 = vpop.f32.mrf.mxu1  ;;  %v146_v32 = vadd.f32 %v2097_v11, %v2559_v13 }
  0xcc   :  { %v140_v14 = vpop.f32.mrf.mxu0 }
  0xcd   :  { %v2117_v15 = vpop.f32.mrf.mxu1  ;;  %v141_v16 = vadd.f32 %v2559_v13, %v140_v14 }
  0xcf   :  { %v252_v17 = vadd.f32 %v248_v12, %v141_v16 }
  0xd1   :  { %2307 = vtanh.f32 %v252_v17  ;;  %v1936_v19 = vmul.f32 -1.442695, %v252_v17 }
  0xd3   :  { %2309 = vpow2.f32 %v1936_v19 }
  0xd5   :  { %v2100_v56 = vpop.f32.mrf.mxu0 }
  0xd7   :  { %v150_v57 = vpop.f32.mrf.mxu0 }
  0xd8   :  { %v151_v62 = vadd.f32 %v2559_v13, %v150_v57 }
  0xd9   :  { %v2637_v58 = vpop.f32.mrf.mxu0 }
  0xdb   :  { %v2639_v59 = vpop.f32.mrf.mxu0 }
  0xdd   :  { %v2641_v60 = vpop.f32.mrf.mxu0 }
  0xde   :  { %v2308_v18 = vpop.eup %2307 }
  0xdf   :  { %262 = vrot.lane.b32.xlu0 %v2308_v18, %s2437_s21  ;;  %v2643_v61 = vpop.f32.mrf.mxu0 }
  0xe0   :  { %v2310_v20 = vpop.eup %2309 }
  0xe1   :  { %v256_v21 = vadd.f32 1.0, %v2310_v20 }
  0xe3   :  { %2311 = vrcp.f32 %v256_v21 }
  0xf0   :  { %v2312_v22 = vpop.eup %2311 }
  0xf1   :  { %v260_v25 = vmul.f32 0.0, %v2312_v22 }
 0x151   :  { %v263_v23 = vpop.permute.xlu0 %262 }
 0x152   :  { %v265_v24 = vmul.f32 %v2312_v22, %v263_v23 }
 0x154   :  { %267 = vrot.lane.b32.xlu0 %v265_v24, %s2438_s2  ;;  %v156_v24 = vadd.f32 %v2100_v56, %v2559_v13 }
 0x1c6   :  { %v268_v26 = vpop.permute.xlu0 %267 }
 0x1c7   :  { %v270_v27 = vadd.f32 %v268_v26, %v260_v25 }
 0x1c9   :  { %2313 = vtanh.f32 %v270_v27 }
 0x1d6   :  { %v2314_v28 = vpop.eup %2313 }
 0x1d7   :  { %273 = vrot.lane.b32.xlu1 %v2314_v28, %s2437_s21 }
 0x249   :  { %v274_v29 = vpop.permute.xlu1 %273 }
 0x24a   :  { %v276_v30 = vmul.f32 %v2312_v22, %v274_v29 }
 0x24c   :  { %278 = vrot.lane.b32.xlu1 %v276_v30, %s2438_s2 }
 0x2be   :  { %v279_v31 = vpop.permute.xlu1 %278 }
 0x2bf   :  { %2127 = vmatmul.mubr.msk.f32.vlgmr.msra.gmra.mxu1 %vm49_vm1, %v279_v31 }
 0x2c0   :  { %2141 = vmatpush3.msra.mxu1 %v2489_v3  ;;  %2148 = vmatprep.mubr.msk.f32.mxu1 %vm2436_vm0, %v2435_v2 }
 0x2c1   :  { %2142 = vmatprep.subr.mxu1 %v2435_v2 }
 0x2c2   :  { %2143 = vmatpush3.msra.mxu1 %v2497_v4 }
 0x2c3   :  { %2144 = vmatprep.subr.mxu1 %v2435_v2 }
 0x2c4   :  { %2145 = vmatpush3.msra.mxu1 %v2512_v7 }
 0x2c5   :  { %2146 = vmatprep.subr.mxu1 %v2435_v2 }
 0x2c6   :  { %2147 = vmatpush3.msra.mxu1 %v2523_v9 }
 0x2c7   :  { %2162 = vmatprep.subr.mxu1 %v2435_v2 }
 0x37f   :  { %v348_v33 = vpop.f32.mrf.mxu1 }
 0x380   :  { %v352_v34 = vadd.f32 %v348_v33, %v146_v32 }
 0x381   :  { %v2128_v35 = vpop.f32.mrf.mxu1 }
 0x382   :  { %2315 = vtanh.f32 %v352_v34  ;;  %v1938_v37 = vmul.f32 -1.442695, %v352_v34 }
 0x384   :  { %2317 = vpow2.f32 %v1938_v37 }
 0x38f   :  { %v2316_v36 = vpop.eup %2315 }
 0x390   :  { %362 = vrot.lane.b32.xlu0 %v2316_v36, %s2437_s21 }
 0x391   :  { %v2318_v38 = vpop.eup %2317 }
 0x392   :  { %v356_v39 = vadd.f32 1.0, %v2318_v38 }
 0x394   :  { %2319 = vrcp.f32 %v356_v39 }
 0x3a1   :  { %v2320_v40 = vpop.eup %2319 }
 0x3a2   :  { %v360_v43 = vmul.f32 %v2320_v40, %v270_v27 }
 0x402   :  { %v363_v41 = vpop.permute.xlu0 %362 }
 0x403   :  { %v365_v42 = vmul.f32 %v2320_v40, %v363_v41 }
 0x405   :  { %367 = vrot.lane.b32.xlu1 %v365_v42, %s2438_s2  ;;  %v161_v42 = vadd.f32 %v2559_v13, %v2639_v59 }
 0x477   :  { %v368_v44 = vpop.permute.xlu1 %367 }
 0x478   :  { %v370_v45 = vadd.f32 %v368_v44, %v360_v43 }
 0x47a   :  { %2321 = vtanh.f32 %v370_v45 }
 0x487   :  { %v2322_v52 = vpop.eup %2321 }
 0x488   :  { %373 = vrot.lane.b32.xlu0 %v2322_v52, %s2437_s21 }
 0x4fa   :  { %v374_v53 = vpop.permute.xlu0 %373 }
 0x4fb   :  { %v376_v54 = vmul.f32 %v2320_v40, %v374_v53 }
 0x4fd   :  { %378 = vrot.lane.b32.xlu1 %v376_v54, %s2438_s2 }
 0x56f   :  { %v379_v55 = vpop.permute.xlu1 %378 }
 0x570   :  { %2138 = vmatmul.mubr.msk.f32.vlgmr.msra.gmra.mxu0 %vm49_vm1, %v379_v55 }
 0x571   :  { %2152 = vmatpush3.msra.mxu0 %v2489_v3  ;;  %2159 = vmatprep.mubr.msk.f32.mxu0 %vm2436_vm0, %v2435_v2 }
 0x572   :  { %2153 = vmatprep.subr.mxu0 %v2435_v2 }
 0x573   :  { %2154 = vmatpush3.msra.mxu0 %v2497_v4 }
 0x574   :  { %2155 = vmatprep.subr.mxu0 %v2435_v2 }
 0x575   :  { %2156 = vmatpush3.msra.mxu0 %v2512_v7 }
 0x576   :  { %2157 = vmatprep.subr.mxu0 %v2435_v2 }
 0x577   :  { %2158 = vmatpush3.msra.mxu0 %v2523_v9 }
 0x578   :  { %2173 = vmatprep.subr.mxu0 %v2435_v2 }
 0x630   :  { %v448_v63 = vpop.f32.mrf.mxu0 }
 0x631   :  { %v452_v0 = vadd.f32 %v448_v63, %v151_v62 }
 0x632   :  { %v2139_v1 = vpop.f32.mrf.mxu0 }
 0x633   :  { %2323 = vtanh.f32 %v452_v0  ;;  %v1940_v8 = vmul.f32 -1.442695, %v452_v0 }
 0x635   :  { %2325 = vpow2.f32 %v1940_v8 }
 0x640   :  { %v2324_v5 = vpop.eup %2323 }
 0x641   :  { %462 = vrot.lane.b32.xlu0 %v2324_v5, %s2437_s21 }
 0x642   :  { %v2326_v11 = vpop.eup %2325 }
 0x643   :  { %v456_v12 = vadd.f32 1.0, %v2326_v11 }
 0x645   :  { %2327 = vrcp.f32 %v456_v12 }
 0x652   :  { %v2328_v14 = vpop.eup %2327 }
 0x653   :  { %v460_v17 = vmul.f32 %v2328_v14, %v370_v45 }
 0x6b3   :  { %v463_v15 = vpop.permute.xlu0 %462 }
 0x6b4   :  { %v465_v16 = vmul.f32 %v2328_v14, %v463_v15 }
 0x6b6   :  { %467 = vrot.lane.b32.xlu1 %v465_v16, %s2438_s2 }
 0x728   :  { %v468_v18 = vpop.permute.xlu1 %467 }
 0x729   :  { %v470_v19 = vadd.f32 %v468_v18, %v460_v17 }
 0x72b   :  { %2329 = vtanh.f32 %v470_v19 }
 0x738   :  { %v2330_v20 = vpop.eup %2329 }
 0x739   :  { %473 = vrot.lane.b32.xlu0 %v2330_v20, %s2437_s21 }
 0x7ab   :  { %v474_v21 = vpop.permute.xlu0 %473 }
 0x7ac   :  { %v476_v22 = vmul.f32 %v2328_v14, %v474_v21 }
 0x7ae   :  { %478 = vrot.lane.b32.xlu1 %v476_v22, %s2438_s2 }
 0x820   :  { %v479_v23 = vpop.permute.xlu1 %478 }
 0x821   :  { %2149 = vmatmul.mubr.msk.f32.vlgmr.msra.gmra.mxu1 %vm49_vm1, %v479_v23 }
 0x822   :  { %2163 = vmatpush3.msra.mxu1 %v2489_v3  ;;  %2170 = vmatprep.mubr.msk.f32.mxu1 %vm2436_vm0, %v2435_v2 }
 0x823   :  { %2164 = vmatprep.subr.mxu1 %v2435_v2 }
 0x824   :  { %2165 = vmatpush3.msra.mxu1 %v2497_v4 }
 0x825   :  { %2166 = vmatprep.subr.mxu1 %v2435_v2 }
 0x826   :  { %2167 = vmatpush3.msra.mxu1 %v2512_v7 }
 0x827   :  { %2168 = vmatprep.subr.mxu1 %v2435_v2 }
 0x828   :  { %2169 = vmatpush3.msra.mxu1 %v2523_v9 }
 0x829   :  { %2184 = vmatprep.subr.mxu1 %v2435_v2 }
 0x8e1   :  { %v548_v25 = vpop.f32.mrf.mxu1 }
 0x8e2   :  { %v552_v26 = vadd.f32 %v548_v25, %v156_v24 }
 0x8e3   :  { %v2150_v27 = vpop.f32.mrf.mxu1 }
 0x8e4   :  { %2331 = vtanh.f32 %v552_v26  ;;  %v1942_v29 = vmul.f32 -1.442695, %v552_v26  ;;  %v171_v26 = vadd.f32 %v2559_v13, %v2643_v61 }
 0x8e6   :  { %2333 = vpow2.f32 %v1942_v29 }
 0x8f1   :  { %v2332_v28 = vpop.eup %2331 }
 0x8f2   :  { %562 = vrot.lane.b32.xlu0 %v2332_v28, %s2437_s21 }
 0x8f3   :  { %v2334_v30 = vpop.eup %2333 }
 0x8f4   :  { %v556_v31 = vadd.f32 1.0, %v2334_v30 }
 0x8f6   :  { %2335 = vrcp.f32 %v556_v31 }
 0x903   :  { %v2336_v32 = vpop.eup %2335 }
 0x904   :  { %v560_v35 = vmul.f32 %v2336_v32, %v470_v19 }
 0x964   :  { %v563_v33 = vpop.permute.xlu0 %562 }
 0x965   :  { %v565_v34 = vmul.f32 %v2336_v32, %v563_v33 }
 0x967   :  { %567 = vrot.lane.b32.xlu1 %v565_v34, %s2438_s2 }
 0x9d9   :  { %v568_v36 = vpop.permute.xlu1 %567 }
 0x9da   :  { %v570_v37 = vadd.f32 %v568_v36, %v560_v35 }
 0x9dc   :  { %2337 = vtanh.f32 %v570_v37 }
 0x9e9   :  { %v2338_v38 = vpop.eup %2337 }
 0x9ea   :  { %573 = vrot.lane.b32.xlu0 %v2338_v38, %s2437_s21 }
 0xa5c   :  { %v574_v39 = vpop.permute.xlu0 %573 }
 0xa5d   :  { %v576_v40 = vmul.f32 %v2336_v32, %v574_v39 }
 0xa5f   :  { %578 = vrot.lane.b32.xlu1 %v576_v40, %s2438_s2 }
 0xad1   :  { %v579_v41 = vpop.permute.xlu1 %578 }
 0xad2   :  { %2160 = vmatmul.mubr.msk.f32.vlgmr.msra.gmra.mxu0 %vm49_vm1, %v579_v41 }
 0xad3   :  { %2174 = vmatpush3.msra.mxu0 %v2489_v3  ;;  %2181 = vmatprep.mubr.msk.f32.mxu0 %vm2436_vm0, %v2435_v2 }
 0xad4   :  { %2175 = vmatprep.subr.mxu0 %v2435_v2 }
 0xad5   :  { %2176 = vmatpush3.msra.mxu0 %v2497_v4 }
 0xad6   :  { %2177 = vmatprep.subr.mxu0 %v2435_v2 }
 0xad7   :  { %2178 = vmatpush3.msra.mxu0 %v2512_v7 }
 0xad8   :  { %2179 = vmatprep.subr.mxu0 %v2435_v2 }
 0xad9   :  { %2180 = vmatpush3.msra.mxu0 %v2523_v9 }
 0xb92   :  { %v648_v43 = vpop.f32.mrf.mxu0 }
 0xb93   :  { %v652_v44 = vadd.f32 %v648_v43, %v161_v42  ;;  %v176_v42 = vadd.f32 %v2641_v60, %v2559_v13  ;;  %v984_v60 = vld [vmem:[%s2945_s4 + $0x18] sm:$0xff] }
 0xb94   :  { %v2161_v45 = vpop.f32.mrf.mxu0  ;;  %2195 = vmatprep.subr.mxu0 %v984_v60 }
 0xb95   :  { %2339 = vtanh.f32 %v652_v44  ;;  %v1944_v53 = vmul.f32 -1.442695, %v652_v44 }
 0xb97   :  { %2341 = vpow2.f32 %v1944_v53 }
 0xba2   :  { %v2340_v52 = vpop.eup %2339 }
 0xba3   :  { %662 = vrot.lane.b32.xlu0 %v2340_v52, %s2437_s21 }
 0xba4   :  { %v2342_v54 = vpop.eup %2341 }
 0xba5   :  { %v656_v55 = vadd.f32 1.0, %v2342_v54 }
 0xba7   :  { %2343 = vrcp.f32 %v656_v55 }
 0xbb4   :  { %v2344_v56 = vpop.eup %2343 }
 0xbb5   :  { %v660_v63 = vmul.f32 %v2344_v56, %v570_v37 }
 0xc15   :  { %v663_v57 = vpop.permute.xlu0 %662 }
 0xc16   :  { %v665_v62 = vmul.f32 %v2344_v56, %v663_v57 }
 0xc18   :  { %667 = vrot.lane.b32.xlu1 %v665_v62, %s2438_s2 }
 0xc8a   :  { %v668_v0 = vpop.permute.xlu1 %667 }
 0xc8b   :  { %v670_v59 = vadd.f32 %v668_v0, %v660_v63 }
 0xc8d   :  { %2345 = vtanh.f32 %v670_v59 }
 0xc9a   :  { %v2346_v1 = vpop.eup %2345 }
 0xc9b   :  { %673 = vrot.lane.b32.xlu0 %v2346_v1, %s2437_s21  ;;  %v2727_v1 = vld [vmem:[%s2946_s6 + $0x18] sm:$0xff] }
 0xd0d   :  { %v674_v5 = vpop.permute.xlu0 %673 }
 0xd0e   :  { %v676_v8 = vmul.f32 %v2344_v56, %v674_v5  ;;  %v2732_v5 = vld [vmem:[%s2946_s6 + $0x10] sm:$0xff] }
 0xd10   :  { %678 = vrot.lane.b32.xlu1 %v676_v8, %s2438_s2  ;;  %v982_v8 = vld [vmem:[%s2945_s4 + $0x8] sm:$0xff] }
 0xd82   :  { %v679_v11 = vpop.permute.xlu1 %678 }
 0xd83   :  { %2171 = vmatmul.mubr.msk.f32.vlgmr.msra.gmra.mxu1 %vm49_vm1, %v679_v11  ;;  %v2742_v11 = vld [vmem:[%s2946_s6 + $0x8] sm:$0xff] }
 0xd84   :  { %2185 = vmatpush3.msra.mxu1 %v2489_v3  ;;  %2192 = vmatprep.mubr.msk.f32.mxu1 %vm2436_vm0, %v2435_v2  ;;  %v166_v3 = vadd.f32 %v2637_v58, %v2559_v13 }
 0xd85   :  { %2186 = vmatprep.subr.mxu1 %v2435_v2 }
 0xd86   :  { %2187 = vmatpush3.msra.mxu1 %v2497_v4 }
 0xd87   :  { %2188 = vmatprep.subr.mxu1 %v2435_v2 }
 0xd88   :  { %2189 = vmatpush3.msra.mxu1 %v2512_v7 }
 0xd89   :  { %2190 = vmatprep.subr.mxu1 %v2435_v2 }
 0xd8a   :  { %2191 = vmatpush3.msra.mxu1 %v2523_v9 }
 0xd8b   :  { %2215 = vmatprep.subr.mxu1 %v2435_v2 }
 0xe43   :  { %v748_v12 = vpop.f32.mrf.mxu1 }
 0xe44   :  { %v752_v14 = vadd.f32 %v748_v12, %v166_v3  ;;  %v981_v3 = vld [vmem:[%s2945_s4] sm:$0xff] }
 0xe45   :  { %v2172_v15 = vpop.f32.mrf.mxu1  ;;  %v2752_v12 = vld [vmem:[%s2946_s6] sm:$0xff] }
 0xe46   :  { %2347 = vtanh.f32 %v752_v14  ;;  %v1946_v4 = vmul.f32 -1.442695, %v752_v14 }
 0xe48   :  { %2349 = vpow2.f32 %v1946_v4 }
 0xe53   :  { %v2348_v16 = vpop.eup %2347 }
 0xe54   :  { %762 = vrot.lane.b32.xlu0 %v2348_v16, %s2437_s21 }
 0xe55   :  { %v2350_v17 = vpop.eup %2349 }
 0xe56   :  { %v756_v7 = vadd.f32 1.0, %v2350_v17 }
 0xe58   :  { %2351 = vrcp.f32 %v756_v7 }
 0xe65   :  { %v2352_v18 = vpop.eup %2351 }
 0xe66   :  { %v760_v20 = vmul.f32 %v2352_v18, %v670_v59  ;;  %v983_v59 = vld [vmem:[%s2945_s4 + $0x10] sm:$0xff] }
 0xec6   :  { %v763_v19 = vpop.permute.xlu0 %762 }
 0xec7   :  { %v765_v9 = vmul.f32 %v2352_v18, %v763_v19 }
 0xec9   :  { %767 = vrot.lane.b32.xlu1 %v765_v9, %s2438_s2 }
 0xf3b   :  { %v768_v21 = vpop.permute.xlu1 %767 }
 0xf3c   :  { %v770_v58 = vadd.f32 %v768_v21, %v760_v20 }
 0xf3e   :  { %2353 = vtanh.f32 %v770_v58 }
 0xf4b   :  { %v2354_v22 = vpop.eup %2353 }
 0xf4c   :  { %773 = vrot.lane.b32.xlu0 %v2354_v22, %s2437_s21 }
 0xfbe   :  { %v774_v23 = vpop.permute.xlu0 %773 }
 0xfbf   :  { %v776_v24 = vmul.f32 %v2352_v18, %v774_v23 }
 0xfc1   :  { %778 = vrot.lane.b32.xlu1 %v776_v24, %s2438_s2 }
0x1033   :  { %v779_v25 = vpop.permute.xlu1 %778 }
0x1034   :  { %2182 = vmatmul.mubr.msk.f32.vlgmr.msra.gmra.mxu0 %vm49_vm1, %v779_v25 }
0x1035   :  { %2203 = vmatprep.mubr.msk.f32.mxu0 %vm49_vm1, %v2506_v6  ;;  %2196 = vmatpush3.msra.mxu0 %v984_v60 }
0x1036   :  { %2197 = vmatprep.subr.mxu0 %v983_v59 }
0x1037   :  { %2198 = vmatpush3.msra.mxu0 %v983_v59 }
0x1038   :  { %2199 = vmatprep.subr.mxu0 %v982_v8 }
0x1039   :  { %2200 = vmatpush3.msra.mxu0 %v982_v8 }
0x103a   :  { %2201 = vmatprep.subr.mxu0 %v981_v3 }
0x103b   :  { %2202 = vmatpush3.msra.mxu0 %v981_v3 }
0x103c   :  { %2204 = vmatmul.mubr.msk.f32.vlgmr.msra.gmra.mxu0 %vm49_vm1, %v2529_v10  ;;  %2237 = vmatprep.subr.mxu0 %v2435_v2 }
0x103d   :  { %2238 = vmatpush3.msra.mxu0 %v2727_v1  ;;  %2206 = vmatprep.mubr.msk.f32.mxu0 %vm49_vm1, %v2583_v46 }
0x103e   :  { %2239 = vmatprep.subr.mxu0 %v2435_v2 }
0x103f   :  { %2240 = vmatpush3.msra.mxu0 %v2732_v5 }
0x1040   :  { %2207 = vmatmul.mubr.msk.f32.gmra.mxu0 %vm49_vm1, %v2588_v47  ;;  %2241 = vmatprep.subr.mxu0 %v2435_v2 }
0x1041   :  { %2209 = vmatprep.mubr.msk.f32.mxu0 %vm49_vm1, %v2593_v48  ;;  %2242 = vmatpush3.msra.mxu0 %v2742_v11 }
0x1042   :  { %2243 = vmatprep.subr.mxu0 %v2435_v2 }
0x1043   :  { %2244 = vmatpush3.msra.mxu0 %v2752_v12 }
0x1044   :  { %2210 = vmatmul.mubr.msk.f32.gmra.mxu0 %vm49_vm1, %v2604_v49  ;;  %2259 = vmatprep.subr.mxu0 %v2435_v2  ;;  %v2799_v49 = vld [vmem:[%s2947_s5] ss:$0 sm:$0xff] }
0x1045   :  { %2212 = vmatprep.mubr.msk.f32.mxu0 %vm49_vm1, %v2609_v50 }
0x1048   :  { %2213 = vmatmul.mubr.msk.f32.gmra.mxu0 %vm49_vm1, %v2618_v51 }
0x1049   :  { %2245 = vmatprep.mubr.msk.f32.mxu0 %vm2436_vm0, %v2435_v2 }
0x10f4   :  { %v848_v27 = vpop.f32.mrf.mxu0 }
0x10f5   :  { %v852_v28 = vadd.f32 %v848_v27, %v171_v26 }
0x10f6   :  { %v2183_v29 = vpop.f32.mrf.mxu0 }
0x10f7   :  { %2355 = vtanh.f32 %v852_v28  ;;  %v1948_v31 = vmul.f32 -1.442695, %v852_v28 }
0x10f9   :  { %2357 = vpow2.f32 %v1948_v31 }
0x10fc   :  { %v2205_v48 = vpop.f32.mrf.mxu0 }
0x10fd   :  { %v1064_v28 = vadd.f32 %v2205_v48, %v2799_v49 }
0x10fe   :  { %v1058_v50 = vpop.f32.mrf.mxu0 }
0x10ff   :  { %v1059_v51 = vadd.f32 %v2799_v49, %v1058_v50 }
0x1104   :  { %v2356_v30 = vpop.eup %2355 }
0x1105   :  { %862 = vrot.lane.b32.xlu0 %v2356_v30, %s2437_s21 }
0x1106   :  { %v2358_v32 = vpop.eup %2357 }
0x1107   :  { %v856_v33 = vadd.f32 1.0, %v2358_v32 }
0x1109   :  { %2359 = vrcp.f32 %v856_v33 }
0x1116   :  { %v2360_v34 = vpop.eup %2359 }
0x1117   :  { %v860_v6 = vmul.f32 %v2360_v34, %v770_v58 }
0x1177   :  { %v863_v35 = vpop.permute.xlu0 %862 }
0x1178   :  { %v865_v36 = vmul.f32 %v2360_v34, %v863_v35 }
0x117a   :  { %867 = vrot.lane.b32.xlu1 %v865_v36, %s2438_s2 }
0x11ec   :  { %v868_v37 = vpop.permute.xlu1 %867 }
0x11ed   :  { %v870_v61 = vadd.f32 %v868_v37, %v860_v6 }
0x11ef   :  { %2361 = vtanh.f32 %v870_v61 }
0x11fc   :  { %v2362_v38 = vpop.eup %2361 }
0x11fd   :  { %873 = vrot.lane.b32.xlu0 %v2362_v38, %s2437_s21 }
0x126f   :  { %v874_v39 = vpop.permute.xlu0 %873 }
0x1270   :  { %v876_v40 = vmul.f32 %v2360_v34, %v874_v39 }
0x1272   :  { %878 = vrot.lane.b32.xlu1 %v876_v40, %s2438_s2 }
0x12e4   :  { %v879_v41 = vpop.permute.xlu1 %878 }
0x12e5   :  { %2193 = vmatmul.mubr.msk.f32.vlgmr.msra.gmra.mxu1 %vm49_vm1, %v879_v41 }
0x12e6   :  { %2223 = vmatprep.mubr.msk.f32.mxu1 %vm2436_vm0, %v2435_v2  ;;  %2216 = vmatpush3.msra.mxu1 %v2727_v1 }
0x12e7   :  { %2217 = vmatprep.subr.mxu1 %v2435_v2 }
0x12e8   :  { %2218 = vmatpush3.msra.mxu1 %v2732_v5 }
0x12e9   :  { %2219 = vmatprep.subr.mxu1 %v2435_v2 }
0x12ea   :  { %2220 = vmatpush3.msra.mxu1 %v2742_v11 }
0x12eb   :  { %2221 = vmatprep.subr.mxu1 %v2435_v2 }
0x12ec   :  { %2222 = vmatpush3.msra.mxu1 %v2752_v12 }
0x12ed   :  { %2226 = vmatprep.subr.mxu1 %v2435_v2 }
0x13a5   :  { %v948_v43 = vpop.f32.mrf.mxu1 }
0x13a6   :  { %v952_v44 = vadd.f32 %v948_v43, %v176_v42 }
0x13a7   :  { %v2194_v45 = vpop.f32.mrf.mxu1 }
0x13a8   :  { %2363 = vtanh.f32 %v952_v44  ;;  %v1950_v53 = vmul.f32 -1.442695, %v952_v44  ;;  %v2208_v44 = vpop.f32.mrf.mxu0 }
0x13aa   :  { %2365 = vpow2.f32 %v1950_v53  ;;  %v1068_v45 = vpop.f32.mrf.mxu0 }
0x13b5   :  { %v2364_v52 = vpop.eup %2363 }
0x13b6   :  { %962 = vrot.lane.b32.xlu0 %v2364_v52, %s2437_s21  ;;  %v2842_v52 = vpop.f32.mrf.mxu0 }
0x13b7   :  { %v2366_v54 = vpop.eup %2365 }
0x13b8   :  { %v956_v55 = vadd.f32 1.0, %v2366_v54  ;;  %v2844_v53 = vpop.f32.mrf.mxu0 }
0x13ba   :  { %2367 = vrcp.f32 %v956_v55  ;;  %v2846_v54 = vpop.f32.mrf.mxu0 }
0x13bc   :  { %v2848_v55 = vpop.f32.mrf.mxu0 }
0x13c7   :  { %v2368_v56 = vpop.eup %2367 }
0x13c8   :  { %v960_v63 = vmul.f32 %v2368_v56, %v870_v61 }
0x1428   :  { %v963_v57 = vpop.permute.xlu0 %962 }
0x1429   :  { %v965_v62 = vmul.f32 %v2368_v56, %v963_v57 }
0x142b   :  { %967 = vrot.lane.b32.xlu1 %v965_v62, %s2438_s2 }
0x149d   :  { %v968_v0 = vpop.permute.xlu1 %967 }
0x149e   :  { %v2715_v13 = vadd.f32 %v968_v0, %v960_v63 }
0x14a0   :  { %2369 = vtanh.f32 %v2715_v13 }
0x14ad   :  { %v2370_v14 = vpop.eup %2369 }
0x14ae   :  { %973 = vrot.lane.b32.xlu0 %v2370_v14, %s2437_s21 }
0x1520   :  { %v974_v10 = vpop.permute.xlu0 %973 }
0x1521   :  { %v976_v46 = vmul.f32 %v2368_v56, %v974_v10  ;;  %v1069_v56 = vadd.f32 %v2799_v49, %v1068_v45 }
0x1523   :  { %1098 = vrot.lane.b32.xlu1 %v976_v46, %s2438_s2 }
0x1595   :  { %v1099_v47 = vpop.permute.xlu1 %1098 }
0x1596   :  { %2224 = vmatmul.mubr.msk.f32.vlgmr.msra.gmra.mxu1 %vm49_vm1, %v1099_v47 }
0x1597   :  { %2227 = vmatpush3.msra.mxu1 %v2727_v1  ;;  %2234 = vmatprep.mubr.msk.f32.mxu1 %vm2436_vm0, %v2435_v2 }
0x1598   :  { %2228 = vmatprep.subr.mxu1 %v2435_v2 }
0x1599   :  { %2229 = vmatpush3.msra.mxu1 %v2732_v5 }
0x159a   :  { %2230 = vmatprep.subr.mxu1 %v2435_v2 }
0x159b   :  { %2231 = vmatpush3.msra.mxu1 %v2742_v11 }
0x159c   :  { %2232 = vmatprep.subr.mxu1 %v2435_v2 }
0x159d   :  { %2233 = vmatpush3.msra.mxu1 %v2752_v12 }
0x159e   :  { %2248 = vmatprep.subr.mxu1 %v2435_v2 }
0x1656   :  { %v1168_v15 = vpop.f32.mrf.mxu1 }
0x1657   :  { %v1172_v16 = vadd.f32 %v1168_v15, %v1059_v51 }
0x1658   :  { %v2225_v4 = vpop.f32.mrf.mxu1 }
0x1659   :  { %2371 = vtanh.f32 %v1172_v16  ;;  %v1961_v7 = vmul.f32 -1.442695, %v1172_v16  ;;  %v1074_v16 = vadd.f32 %v2208_v44, %v2799_v49 }
0x165b   :  { %2373 = vpow2.f32 %v1961_v7 }
0x1666   :  { %v2372_v17 = vpop.eup %2371 }
0x1667   :  { %1182 = vrot.lane.b32.xlu0 %v2372_v17, %s2437_s21 }
0x1668   :  { %v2374_v18 = vpop.eup %2373 }
0x1669   :  { %v1176_v19 = vadd.f32 1.0, %v2374_v18 }
0x166b   :  { %2375 = vrcp.f32 %v1176_v19 }
0x1678   :  { %v2376_v9 = vpop.eup %2375 }
0x1679   :  { %v1180_v58 = vmul.f32 %v2376_v9, %v2715_v13 }
0x16d9   :  { %v1183_v20 = vpop.permute.xlu0 %1182 }
0x16da   :  { %v1185_v21 = vmul.f32 %v2376_v9, %v1183_v20 }
0x16dc   :  { %1187 = vrot.lane.b32.xlu1 %v1185_v21, %s2438_s2 }
0x174e   :  { %v1188_v22 = vpop.permute.xlu1 %1187 }
0x174f   :  { %v1190_v23 = vadd.f32 %v1188_v22, %v1180_v58 }
0x1751   :  { %2377 = vtanh.f32 %v1190_v23 }
0x175e   :  { %v2378_v24 = vpop.eup %2377 }
0x175f   :  { %1193 = vrot.lane.b32.xlu0 %v2378_v24, %s2437_s21 }
0x17d1   :  { %v1194_v25 = vpop.permute.xlu0 %1193 }
0x17d2   :  { %v1196_v26 = vmul.f32 %v2376_v9, %v1194_v25 }
0x17d4   :  { %1198 = vrot.lane.b32.xlu1 %v1196_v26, %s2438_s2 }
0x1846   :  { %v1199_v27 = vpop.permute.xlu1 %1198 }
0x1847   :  { %1201 = vst.msk [vmem:[%s2948_s7] sm:$0xff] %vm49_vm1, %v1199_v27  ;;  %2235 = vmatmul.mubr.msk.f32.vlgmr.msra.gmra.mxu1 %vm49_vm1, %v1199_v27 }
0x1848   :  { %2249 = vmatpush3.msra.mxu1 %v2727_v1  ;;  %2256 = vmatprep.mubr.msk.f32.mxu1 %vm2436_vm0, %v2435_v2 }
0x1849   :  { %2250 = vmatprep.subr.mxu1 %v2435_v2 }
0x184a   :  { %2251 = vmatpush3.msra.mxu1 %v2732_v5 }
0x184b   :  { %2252 = vmatprep.subr.mxu1 %v2435_v2 }
0x184c   :  { %2253 = vmatpush3.msra.mxu1 %v2742_v11 }
0x184d   :  { %2254 = vmatprep.subr.mxu1 %v2435_v2 }
0x184e   :  { %2255 = vmatpush3.msra.mxu1 %v2752_v12 }
0x184f   :  { %2270 = vmatprep.subr.mxu1 %v2435_v2 }
0x1907   :  { %v1270_v29 = vpop.f32.mrf.mxu1 }
0x1908   :  { %v1274_v30 = vadd.f32 %v1270_v29, %v1064_v28 }
0x1909   :  { %v2236_v31 = vpop.f32.mrf.mxu1 }
0x190a   :  { %2379 = vtanh.f32 %v1274_v30  ;;  %v1963_v33 = vmul.f32 -1.442695, %v1274_v30  ;;  %v1079_v30 = vadd.f32 %v2799_v49, %v2844_v53  ;;  %v1084_v53 = vadd.f32 %v2842_v52, %v2799_v49 }
0x190c   :  { %2381 = vpow2.f32 %v1963_v33 }
0x1917   :  { %v2380_v32 = vpop.eup %2379 }
0x1918   :  { %1284 = vrot.lane.b32.xlu0 %v2380_v32, %s2437_s21 }
0x1919   :  { %v2382_v34 = vpop.eup %2381 }
0x191a   :  { %v1278_v35 = vadd.f32 1.0, %v2382_v34 }
0x191c   :  { %2383 = vrcp.f32 %v1278_v35 }
0x1929   :  { %v2384_v36 = vpop.eup %2383 }
0x192a   :  { %v1282_v61 = vmul.f32 %v2384_v36, %v1190_v23 }
0x198a   :  { %v1285_v6 = vpop.permute.xlu0 %1284 }
0x198b   :  { %v1287_v37 = vmul.f32 %v2384_v36, %v1285_v6 }
0x198d   :  { %1289 = vrot.lane.b32.xlu1 %v1287_v37, %s2438_s2 }
0x19ff   :  { %v1290_v38 = vpop.permute.xlu1 %1289 }
0x1a00   :  { %v1292_v39 = vadd.f32 %v1290_v38, %v1282_v61 }
0x1a02   :  { %2385 = vtanh.f32 %v1292_v39 }
0x1a0f   :  { %v2386_v40 = vpop.eup %2385 }
0x1a10   :  { %1295 = vrot.lane.b32.xlu0 %v2386_v40, %s2437_s21 }
0x1a82   :  { %v1296_v41 = vpop.permute.xlu0 %1295 }
0x1a83   :  { %v1298_v42 = vmul.f32 %v2384_v36, %v1296_v41 }
0x1a85   :  { %1300 = vrot.lane.b32.xlu1 %v1298_v42, %s2438_s2 }
0x1af7   :  { %v1301_v43 = vpop.permute.xlu1 %1300 }
0x1af8   :  { %1964 = vst.msk [vmem:[%s2948_s7 + $0x8] sm:$0xff] %vm49_vm1, %v1301_v43  ;;  %2246 = vmatmul.mubr.msk.f32.vlgmr.msra.gmra.mxu0 %vm49_vm1, %v1301_v43 }
0x1af9   :  { %2260 = vmatpush3.msra.mxu0 %v2727_v1  ;;  %2267 = vmatprep.mubr.msk.f32.mxu0 %vm2436_vm0, %v2435_v2 }
0x1afa   :  { %2261 = vmatprep.subr.mxu0 %v2435_v2 }
0x1afb   :  { %2262 = vmatpush3.msra.mxu0 %v2732_v5 }
0x1afc   :  { %2263 = vmatprep.subr.mxu0 %v2435_v2 }
0x1afd   :  { %2264 = vmatpush3.msra.mxu0 %v2742_v11 }
0x1afe   :  { %2265 = vmatprep.subr.mxu0 %v2435_v2 }
0x1aff   :  { %2266 = vmatpush3.msra.mxu0 %v2752_v12 }
0x1b00   :  { %2281 = vmatprep.subr.mxu0 %v2435_v2 }
0x1bb8   :  { %v1373_v57 = vpop.f32.mrf.mxu0 }
0x1bb9   :  { %v1377_v62 = vadd.f32 %v1373_v57, %v1069_v56 }
0x1bba   :  { %v2247_v63 = vpop.f32.mrf.mxu0 }
0x1bbb   :  { %2387 = vtanh.f32 %v1377_v62  ;;  %v1966_v13 = vmul.f32 -1.442695, %v1377_v62 }
0x1bbd   :  { %2389 = vpow2.f32 %v1966_v13 }
0x1bc8   :  { %v2388_v0 = vpop.eup %2387 }
0x1bc9   :  { %1387 = vrot.lane.b32.xlu0 %v2388_v0, %s2437_s21 }
0x1bca   :  { %v2390_v60 = vpop.eup %2389 }
0x1bcb   :  { %v1381_v59 = vadd.f32 1.0, %v2390_v60 }
0x1bcd   :  { %2391 = vrcp.f32 %v1381_v59 }
0x1bda   :  { %v2392_v8 = vpop.eup %2391 }
0x1bdb   :  { %v1385_v10 = vmul.f32 %v2392_v8, %v1292_v39 }
0x1c3b   :  { %v1388_v3 = vpop.permute.xlu0 %1387 }
0x1c3c   :  { %v1390_v14 = vmul.f32 %v2392_v8, %v1388_v3 }
0x1c3e   :  { %1392 = vrot.lane.b32.xlu1 %v1390_v14, %s2438_s2 }
0x1cb0   :  { %v1393_v46 = vpop.permute.xlu1 %1392 }
0x1cb1   :  { %v1395_v47 = vadd.f32 %v1393_v46, %v1385_v10  ;;  %v1089_v10 = vadd.f32 %v2799_v49, %v2848_v55 }
0x1cb3   :  { %2393 = vtanh.f32 %v1395_v47 }
0x1cc0   :  { %v2394_v48 = vpop.eup %2393 }
0x1cc1   :  { %1398 = vrot.lane.b32.xlu0 %v2394_v48, %s2437_s21 }
0x1d33   :  { %v1399_v50 = vpop.permute.xlu0 %1398 }
0x1d34   :  { %v1401_v51 = vmul.f32 %v2392_v8, %v1399_v50 }
0x1d36   :  { %1403 = vrot.lane.b32.xlu1 %v1401_v51, %s2438_s2 }
0x1da8   :  { %v1404_v15 = vpop.permute.xlu1 %1403 }
0x1da9   :  { %1967 = vst.msk [vmem:[%s2948_s7 + $0x10] sm:$0xff] %vm49_vm1, %v1404_v15  ;;  %2257 = vmatmul.mubr.msk.f32.vlgmr.msra.gmra.mxu1 %vm49_vm1, %v1404_v15 }
0x1daa   :  { %2271 = vmatpush3.msra.mxu1 %v2727_v1  ;;  %2278 = vmatprep.mubr.msk.f32.mxu1 %vm2436_vm0, %v2435_v2 }
0x1dab   :  { %2272 = vmatprep.subr.mxu1 %v2435_v2 }
0x1dac   :  { %2273 = vmatpush3.msra.mxu1 %v2732_v5 }
0x1dad   :  { %2274 = vmatprep.subr.mxu1 %v2435_v2 }
0x1dae   :  { %2275 = vmatpush3.msra.mxu1 %v2742_v11 }
0x1daf   :  { %2276 = vmatprep.subr.mxu1 %v2435_v2 }
0x1db0   :  { %2277 = vmatpush3.msra.mxu1 %v2752_v12 }
0x1db1   :  { %2292 = vmatprep.subr.mxu1 %v2435_v2 }
0x1e69   :  { %v1476_v4 = vpop.f32.mrf.mxu1 }
0x1e6a   :  { %v1480_v17 = vadd.f32 %v1476_v4, %v1074_v16 }
0x1e6b   :  { %v2258_v7 = vpop.f32.mrf.mxu1 }
0x1e6c   :  { %2395 = vtanh.f32 %v1480_v17  ;;  %v1969_v19 = vmul.f32 -1.442695, %v1480_v17 }
0x1e6e   :  { %2397 = vpow2.f32 %v1969_v19 }
0x1e79   :  { %v2396_v18 = vpop.eup %2395 }
0x1e7a   :  { %1490 = vrot.lane.b32.xlu0 %v2396_v18, %s2437_s21 }
0x1e7b   :  { %v2398_v9 = vpop.eup %2397 }
0x1e7c   :  { %v1484_v20 = vadd.f32 1.0, %v2398_v9 }
0x1e7e   :  { %2399 = vrcp.f32 %v1484_v20 }
0x1e8b   :  { %v2400_v21 = vpop.eup %2399 }
0x1e8c   :  { %v1488_v23 = vmul.f32 %v2400_v21, %v1395_v47 }
0x1eec   :  { %v1491_v58 = vpop.permute.xlu0 %1490 }
0x1eed   :  { %v1493_v22 = vmul.f32 %v2400_v21, %v1491_v58 }
0x1eef   :  { %1495 = vrot.lane.b32.xlu1 %v1493_v22, %s2438_s2  ;;  %v1094_v22 = vadd.f32 %v2846_v54, %v2799_v49 }
0x1f61   :  { %v1496_v24 = vpop.permute.xlu1 %1495 }
0x1f62   :  { %v1498_v25 = vadd.f32 %v1496_v24, %v1488_v23 }
0x1f64   :  { %2401 = vtanh.f32 %v1498_v25 }
0x1f71   :  { %v2402_v26 = vpop.eup %2401 }
0x1f72   :  { %1501 = vrot.lane.b32.xlu0 %v2402_v26, %s2437_s21 }
0x1fe4   :  { %v1502_v27 = vpop.permute.xlu0 %1501 }
0x1fe5   :  { %v1504_v28 = vmul.f32 %v2400_v21, %v1502_v27 }
0x1fe7   :  { %1506 = vrot.lane.b32.xlu1 %v1504_v28, %s2438_s2 }
0x2059   :  { %v1507_v29 = vpop.permute.xlu1 %1506 }
0x205a   :  { %1970 = vst.msk [vmem:[%s2948_s7 + $0x18] sm:$0xff] %vm49_vm1, %v1507_v29  ;;  %2268 = vmatmul.mubr.msk.f32.vlgmr.msra.gmra.mxu0 %vm49_vm1, %v1507_v29 }
0x205b   :  { %2282 = vmatpush3.msra.mxu0 %v2727_v1  ;;  %2289 = vmatprep.mubr.msk.f32.mxu0 %vm2436_vm0, %v2435_v2 }
0x205c   :  { %2283 = vmatprep.subr.mxu0 %v2435_v2 }
0x205d   :  { %2284 = vmatpush3.msra.mxu0 %v2732_v5 }
0x205e   :  { %2285 = vmatprep.subr.mxu0 %v2435_v2 }
0x205f   :  { %2286 = vmatpush3.msra.mxu0 %v2742_v11 }
0x2060   :  { %2287 = vmatprep.subr.mxu0 %v2435_v2 }
0x2061   :  { %2288 = vmatpush3.msra.mxu0 %v2752_v12 }
0x211a   :  { %v1579_v31 = vpop.f32.mrf.mxu0 }
0x211b   :  { %v1583_v32 = vadd.f32 %v1579_v31, %v1079_v30 }
0x211c   :  { %v2269_v33 = vpop.f32.mrf.mxu0 }
0x211d   :  { %2403 = vtanh.f32 %v1583_v32  ;;  %v1972_v35 = vmul.f32 -1.442695, %v1583_v32 }
0x211f   :  { %2405 = vpow2.f32 %v1972_v35 }
0x212a   :  { %v2404_v34 = vpop.eup %2403 }
0x212b   :  { %1593 = vrot.lane.b32.xlu0 %v2404_v34, %s2437_s21 }
0x212c   :  { %v2406_v36 = vpop.eup %2405 }
0x212d   :  { %v1587_v6 = vadd.f32 1.0, %v2406_v36 }
0x212f   :  { %2407 = vrcp.f32 %v1587_v6 }
0x213c   :  { %v2408_v37 = vpop.eup %2407 }
0x213d   :  { %v1591_v39 = vmul.f32 %v2408_v37, %v1498_v25 }
0x219d   :  { %v1594_v61 = vpop.permute.xlu0 %1593 }
0x219e   :  { %v1596_v38 = vmul.f32 %v2408_v37, %v1594_v61 }
0x21a0   :  { %1598 = vrot.lane.b32.xlu1 %v1596_v38, %s2438_s2 }
0x2212   :  { %v1599_v40 = vpop.permute.xlu1 %1598 }
0x2213   :  { %v1601_v41 = vadd.f32 %v1599_v40, %v1591_v39 }
0x2215   :  { %2409 = vtanh.f32 %v1601_v41 }
0x2222   :  { %v2410_v42 = vpop.eup %2409 }
0x2223   :  { %1604 = vrot.lane.b32.xlu0 %v2410_v42, %s2437_s21 }
0x2295   :  { %v1605_v43 = vpop.permute.xlu0 %1604 }
0x2296   :  { %v1607_v44 = vmul.f32 %v2408_v37, %v1605_v43 }
0x2298   :  { %1609 = vrot.lane.b32.xlu1 %v1607_v44, %s2438_s2 }
0x230a   :  { %v1610_v45 = vpop.permute.xlu1 %1609 }
0x230b   :  { %1973 = vst.msk [vmem:[%s2948_s7 + $0x20] sm:$0xff] %vm49_vm1, %v1610_v45  ;;  %2279 = vmatmul.mubr.msk.f32.vlgmr.msra.gmra.mxu1 %vm49_vm1, %v1610_v45 }
0x230c   :  { %2293 = vmatpush3.msra.mxu1 %v2727_v1  ;;  %2300 = vmatprep.mubr.msk.f32.mxu1 %vm2436_vm0, %v2435_v2 }
0x230d   :  { %2294 = vmatprep.subr.mxu1 %v2435_v2 }
0x230e   :  { %2295 = vmatpush3.msra.mxu1 %v2732_v5 }
0x230f   :  { %2296 = vmatprep.subr.mxu1 %v2435_v2 }
0x2310   :  { %2297 = vmatpush3.msra.mxu1 %v2742_v11 }
0x2311   :  { %2298 = vmatprep.subr.mxu1 %v2435_v2 }
0x2312   :  { %2299 = vmatpush3.msra.mxu1 %v2752_v12 }
0x23cb   :  { %v1682_v56 = vpop.f32.mrf.mxu1 }
0x23cc   :  { %v1686_v1 = vadd.f32 %v1682_v56, %v1084_v53 }
0x23cd   :  { %v2280_v57 = vpop.f32.mrf.mxu1 }
0x23ce   :  { %2411 = vtanh.f32 %v1686_v1  ;;  %v1975_v63 = vmul.f32 -1.442695, %v1686_v1 }
0x23d0   :  { %2413 = vpow2.f32 %v1975_v63 }
0x23db   :  { %v2412_v62 = vpop.eup %2411 }
0x23dc   :  { %1696 = vrot.lane.b32.xlu0 %v2412_v62, %s2437_s21 }
0x23dd   :  { %v2414_v5 = vpop.eup %2413 }
0x23de   :  { %v1690_v0 = vadd.f32 1.0, %v2414_v5 }
0x23e0   :  { %2415 = vrcp.f32 %v1690_v0 }
0x23ed   :  { %v2416_v11 = vpop.eup %2415 }
0x23ee   :  { %v1694_v12 = vmul.f32 %v2416_v11, %v1601_v41 }
0x244e   :  { %v1697_v13 = vpop.permute.xlu0 %1696 }
0x244f   :  { %v1699_v2 = vmul.f32 %v2416_v11, %v1697_v13 }
0x2451   :  { %1701 = vrot.lane.b32.xlu1 %v1699_v2, %s2438_s2 }
0x24c3   :  { %v1702_v60 = vpop.permute.xlu1 %1701 }
0x24c4   :  { %v1704_v52 = vadd.f32 %v1702_v60, %v1694_v12 }
0x24c6   :  { %2417 = vtanh.f32 %v1704_v52 }
0x24d3   :  { %v2418_v59 = vpop.eup %2417 }
0x24d4   :  { %1707 = vrot.lane.b32.xlu0 %v2418_v59, %s2437_s21 }
0x2546   :  { %v1708_v8 = vpop.permute.xlu0 %1707 }
0x2547   :  { %v1710_v3 = vmul.f32 %v2416_v11, %v1708_v8 }
0x2549   :  { %1712 = vrot.lane.b32.xlu1 %v1710_v3, %s2438_s2 }
0x25bb   :  { %v1713_v14 = vpop.permute.xlu1 %1712 }
0x25bc   :  { %1976 = vst.msk [vmem:[%s2948_s7 + $0x28] sm:$0xff] %vm49_vm1, %v1713_v14  ;;  %2290 = vmatmul.mubr.msk.f32.vlgmr.msra.gmra.mxu0 %vm49_vm1, %v1713_v14 }
0x267c   :  { %v1785_v46 = vpop.f32.mrf.mxu0 }
0x267d   :  { %v1789_v47 = vadd.f32 %v1785_v46, %v1089_v10 }
0x267e   :  { %v2291_v48 = vpop.f32.mrf.mxu0 }
0x267f   :  { %2419 = vtanh.f32 %v1789_v47  ;;  %v1978_v51 = vmul.f32 -1.442695, %v1789_v47 }
0x2681   :  { %2421 = vpow2.f32 %v1978_v51 }
0x268c   :  { %v2420_v50 = vpop.eup %2419 }
0x268d   :  { %1799 = vrot.lane.b32.xlu0 %v2420_v50, %s2437_s21 }
0x268e   :  { %v2422_v15 = vpop.eup %2421 }
0x268f   :  { %v1793_v16 = vadd.f32 1.0, %v2422_v15 }
0x2691   :  { %2423 = vrcp.f32 %v1793_v16 }
0x269e   :  { %v2424_v4 = vpop.eup %2423 }
0x269f   :  { %v1797_v18 = vmul.f32 %v2424_v4, %v1704_v52 }
0x26ff   :  { %v1800_v17 = vpop.permute.xlu0 %1799 }
0x2700   :  { %v1802_v7 = vmul.f32 %v2424_v4, %v1800_v17 }
0x2702   :  { %1804 = vrot.lane.b32.xlu1 %v1802_v7, %s2438_s2 }
0x2774   :  { %v1805_v19 = vpop.permute.xlu1 %1804 }
0x2775   :  { %v1807_v55 = vadd.f32 %v1805_v19, %v1797_v18 }
0x2777   :  { %2425 = vtanh.f32 %v1807_v55 }
0x2784   :  { %v2426_v9 = vpop.eup %2425 }
0x2785   :  { %1810 = vrot.lane.b32.xlu0 %v2426_v9, %s2437_s21 }
0x27f7   :  { %v1811_v20 = vpop.permute.xlu0 %1810 }
0x27f8   :  { %v1813_v21 = vmul.f32 %v2424_v4, %v1811_v20 }
0x27fa   :  { %1815 = vrot.lane.b32.xlu1 %v1813_v21, %s2438_s2 }
0x286c   :  { %v1816_v58 = vpop.permute.xlu1 %1815 }
0x286d   :  { %1979 = vst.msk [vmem:[%s2948_s7 + $0x30] sm:$0xff] %vm49_vm1, %v1816_v58  ;;  %2301 = vmatmul.mubr.msk.f32.vlgmr.msra.gmra.mxu1 %vm49_vm1, %v1816_v58 }
0x292d   :  { %v1888_v23 = vpop.f32.mrf.mxu1 }
0x292e   :  { %v1892_v24 = vadd.f32 %v1888_v23, %v1094_v22 }
0x292f   :  { %v2302_v25 = vpop.f32.mrf.mxu1 }
0x2930   :  { %2427 = vtanh.f32 %v1892_v24  ;;  %v1981_v27 = vmul.f32 -1.442695, %v1892_v24 }
0x2932   :  { %2429 = vpow2.f32 %v1981_v27 }
0x293d   :  { %v2428_v26 = vpop.eup %2427 }
0x293e   :  { %1902 = vrot.lane.b32.xlu0 %v2428_v26, %s2437_s21 }
0x293f   :  { %v2430_v28 = vpop.eup %2429 }
0x2940   :  { %v1896_v29 = vadd.f32 1.0, %v2430_v28 }
0x2942   :  { %2431 = vrcp.f32 %v1896_v29 }
0x294f   :  { %v2432_v30 = vpop.eup %2431 }
0x2950   :  { %v1900_v33 = vmul.f32 %v2432_v30, %v1807_v55 }
0x29b0   :  { %v1903_v31 = vpop.permute.xlu0 %1902 }
0x29b1   :  { %v1905_v32 = vmul.f32 %v2432_v30, %v1903_v31 }
0x29b3   :  { %1907 = vrot.lane.b32.xlu1 %v1905_v32, %s2438_s2 }
0x2a25   :  { %v1908_v34 = vpop.permute.xlu1 %1907 }
0x2a26   :  { %v1910_v49 = vadd.f32 %v1908_v34, %v1900_v33 }
0x2a28   :  { %2433 = vtanh.f32 %v1910_v49 }
0x2a35   :  { %v2434_v54 = vpop.eup %2433 }
0x2a36   :  { %1913 = vrot.lane.b32.xlu0 %v2434_v54, %s2437_s21 }
0x2aa8   :  { %v1914_v35 = vpop.permute.xlu0 %1913 }
0x2aa9   :  { %v1916_v36 = vmul.f32 %v2432_v30, %v1914_v35 }
0x2aab   :  { %1918 = vrot.lane.b32.xlu1 %v1916_v36, %s2438_s2 }
0x2b1d   :  { %v1919_v6 = vpop.permute.xlu1 %1918 }
0x2b1e   :  { %1982 = vst.msk [vmem:[%s2948_s7 + $0x38] sm:$0xff] %vm49_vm1, %v1919_v6 }

</bundles_post_ra>
